<compile_context>
chip_gen: v6e
topology: v6e:2x2x1
jax: 0.10.0
libtpu: 0.0.40
codegen_flags: <defaults>
</compile_context>

<pallas_src>
import jax
import jax.numpy as jnp
from jax import lax
from jax.experimental import pallas as pl
from jax.experimental.pallas import tpu as pltpu


def _gru_kernel(gi_ref,      # (T, Bp, 3*Hp)  precomputed input-side gate preacts (lane-dense)
                whh_ref,     # (Hp, 3*Hp)     fused hidden->gate weights [r|z|n], 128-aligned blocks
                bhn_ref,     # (1, 3*Hp)      zeros except n-block holds b_hn
                fcw_ref,     # (Hp, Op)       FC weight (zero-padded rows/cols beyond H/O)
                fcb_ref,     # (1, Op)        FC bias (zero-padded beyond O)
                out_ref):    # (Bp, Op)
    T = gi_ref.shape[0]
    Bp = gi_ref.shape[1]
    Hp = whh_ref.shape[0]

    whh = whh_ref[...]
    bhn = bhn_ref[...]

    def step(t, h):
        gi = gi_ref[t]                                                    # (Bp, 3*Hp)
        # Single fused hidden-side matmul per step; b_hn added only to n-block.
        gh = jnp.dot(h, whh, preferred_element_type=jnp.float32) + bhn    # (Bp, 3*Hp)
        # PyTorch GRU equations (gate order r, z, n); slices are 128-lane aligned.
        r = jax.nn.sigmoid(gi[:, 0:Hp] + gh[:, 0:Hp])
        z = jax.nn.sigmoid(gi[:, Hp:2 * Hp] + gh[:, Hp:2 * Hp])
        n = jnp.tanh(gi[:, 2 * Hp:3 * Hp] + r * gh[:, 2 * Hp:3 * Hp])
        # Padded lanes (cols H..Hp): gi=gh=0 -> r=z=0.5, n=0, so h stays 0 there.
        return (1.0 - z) * n + z * h

    h0 = jnp.zeros((Bp, Hp), jnp.float32)
    # Static trip count; fully unroll so adjacent timesteps interleave.
    h_last = lax.fori_loop(0, T, step, h0, unroll=True)

    # Dropout is identity in eval mode.  Lane-dense (Bp, Op) unmasked store.
    out = jnp.dot(h_last, fcw_ref[...], preferred_element_type=jnp.float32) + fcb_ref[...]
    out_ref[...] = out.astype(out_ref.dtype)


def init_params(key, input_size=1, hidden_size=50, output_size=1):
    """Deterministic init mirroring PyTorch's U(-1/sqrt(H), 1/sqrt(H))."""
    H, I, O = hidden_size, input_size, output_size
    k = 1.0 / jnp.sqrt(jnp.float32(H))
    keys = jax.random.split(key, 6)
    w_ih = jax.random.uniform(keys[0], (3 * H, I), jnp.float32, -k, k)   # rows: [r|z|n]
    w_hh = jax.random.uniform(keys[1], (3 * H, H), jnp.float32, -k, k)
    b_ih = jax.random.uniform(keys[2], (3 * H,), jnp.float32, -k, k)
    b_hh = jax.random.uniform(keys[3], (3 * H,), jnp.float32, -k, k)
    fc_w = jax.random.uniform(keys[4], (O, H), jnp.float32, -k, k)
    fc_b = jax.random.uniform(keys[5], (O,), jnp.float32, -k, k)
    return dict(w_ih=w_ih, w_hh=w_hh, b_ih=b_ih, b_hh=b_hh, fc_w=fc_w, fc_b=fc_b)


def gru_model_forward(x, params, hidden_size=50):
    """x: (B, T, I) batch-first, like the PyTorch module. Returns (B, O)."""
    B, T, I = x.shape
    H = hidden_size
    O = params["fc_w"].shape[0]
    Hp = ((H + 127) // 128) * 128     # pad each gate block to a full 128-lane tile
    Bp = ((B + 7) // 8) * 8           # pad batch to a full 8-sublane tile
    Op = ((O + 127) // 128) * 128     # pad FC output to a full 128-lane tile

    w_ih = params["w_ih"]          # (3H, I)
    w_hh = params["w_hh"]          # (3H, H)
    b_ih = params["b_ih"]          # (3H,)
    b_hh = params["b_hh"]          # (3H,)

    wir, wiz, win = w_ih[0:H], w_ih[H:2 * H], w_ih[2 * H:3 * H]      # (H, I)
    whr, whz, whn = w_hh[0:H], w_hh[H:2 * H], w_hh[2 * H:3 * H]      # (H, H)
    bir, biz, bin_ = b_ih[0:H], b_ih[H:2 * H], b_ih[2 * H:3 * H]
    bhr, bhz, bhn = b_hh[0:H], b_hh[H:2 * H], b_hh[2 * H:3 * H]

    xf = x.astype(jnp.float32)

    # --- Hoisted input-side projections (parallel over T), biases pre-folded ---
    gi_r = jnp.einsum('bti,hi->bth', xf, wir) + (bir + bhr)          # (B, T, H)
    gi_z = jnp.einsum('bti,hi->bth', xf, wiz) + (biz + bhz)
    gi_n = jnp.einsum('bti,hi->bth', xf, win) + bin_                 # b_hn stays in-kernel

    def pad_gate(a):  # pad last dim H -> Hp with zeros
        return jnp.pad(a, ((0, 0), (0, 0), (0, Hp - H)))

    gi = jnp.concatenate([pad_gate(gi_r), pad_gate(gi_z), pad_gate(gi_n)], axis=-1)
    gi = jnp.pad(gi, ((0, Bp - B), (0, 0), (0, 0)))                  # pad batch (rows of zeros)
    gi = jnp.transpose(gi, (1, 0, 2))                                # (T, Bp, 3*Hp) time-major

    # --- Fused, 128-aligned hidden->gate weights (transposed for h @ W) ---
    def pad_w(w):     # (H_out, H_in) -> (Hp_in, Hp_out), transposed & zero-padded
        return jnp.pad(w.T, ((0, Hp - H), (0, Hp - H)))

    whh = jnp.concatenate([pad_w(whr), pad_w(whz), pad_w(whn)], axis=1)  # (Hp, 3*Hp)

    bh_row = jnp.zeros((1, 3 * Hp), jnp.float32)
    bh_row = bh_row.at[0, 2 * Hp:2 * Hp + H].set(bhn)                # only n-block gets b_hn

    fcw = jnp.pad(params["fc_w"].T.astype(jnp.float32),
                  ((0, Hp - H), (0, Op - O)))                        # (Hp, Op)
    fcb = jnp.pad(params["fc_b"].astype(jnp.float32).reshape(1, O),
                  ((0, 0), (0, Op - O)))                             # (1, Op)

    vmem_spec = pl.BlockSpec(memory_space=pltpu.MemorySpace.VMEM)

    out_padded = pl.pallas_call(
        _gru_kernel,
        out_shape=jax.ShapeDtypeStruct((Bp, Op), jnp.float32),
        in_specs=[vmem_spec] * 5,
        out_specs=vmem_spec,
    )(gi, whh, bh_row, fcw, fcb)
    return out_padded[:B, :O]


def gru_model_ref(x, params, hidden_size=50):
    """Pure-JAX reference of the same forward pass (for sanity checking)."""
    B, T, I = x.shape
    H = hidden_size
    w_ih, w_hh = params["w_ih"], params["w_hh"]
    b_ih, b_hh = params["b_ih"], params["b_hh"]
    h = jnp.zeros((B, H), jnp.float32)
    for t in range(T):
        x_t = x[:, t, :]
        gi = x_t @ w_ih.T + b_ih
        gh = h @ w_hh.T + b_hh
        r = jax.nn.sigmoid(gi[:, 0:H] + gh[:, 0:H])
        z = jax.nn.sigmoid(gi[:, H:2 * H] + gh[:, H:2 * H])
        n = jnp.tanh(gi[:, 2 * H:] + r * gh[:, 2 * H:])
        h = (1.0 - z) * n + z * h
    return h @ params["fc_w"].T + params["fc_b"]


if __name__ == "__main__":
    B, T, I, H, O = 2, 8, 1, 50, 1

    key = jax.random.PRNGKey(0)
    k_x, k_p = jax.random.split(key)
    x = jax.random.normal(k_x, (B, T, I), jnp.float32)
    params = init_params(k_p, input_size=I, hidden_size=H, output_size=O)

    out = gru_model_forward(x, params, hidden_size=H)
    out = jax.block_until_ready(out)

    ref = gru_model_ref(x, params, hidden_size=H)
    assert out.shape == (B, O)
    assert jnp.allclose(out, ref, atol=1e-4, rtol=1e-4), (out, ref)

    print("KERNEL_OK")
</pallas_src>

<mosaic_0001>
module attributes {stable_mosaic.version = 11 : i64} {
  func.func @_gru_kernel(%arg0: memref<8x8x384xf32, #tpu.memory_space<vmem>>, %arg1: memref<128x384xf32, #tpu.memory_space<vmem>>, %arg2: memref<1x384xf32, #tpu.memory_space<vmem>>, %arg3: memref<128x128xf32, #tpu.memory_space<vmem>>, %arg4: memref<1x128xf32, #tpu.memory_space<vmem>>, %arg5: memref<8x128xf32, #tpu.memory_space<vmem>>) attributes {dimension_semantics = [], scalar_prefetch = 0 : i64, scratch_operands = 0 : i64, tpu.core_type = #tpu.core_type<tc>} {
    %c0 = arith.constant 0 : index
    %c0_0 = arith.constant 0 : index
    %0 = vector.load %arg1[%c0, %c0_0] : memref<128x384xf32, #tpu.memory_space<vmem>>, vector<128x384xf32>
    %c0_1 = arith.constant 0 : index
    %c0_2 = arith.constant 0 : index
    %1 = vector.load %arg2[%c0_1, %c0_2] : memref<1x384xf32, #tpu.memory_space<vmem>>, vector<1x384xf32>
    %cst = arith.constant 0.000000e+00 : f32
    %2 = vector.broadcast %cst : f32 to vector<8x128xf32>
    %c0_i32 = arith.constant 0 : i32
    %3 = arith.index_cast %c0_i32 : i32 to index
    %c0_3 = arith.constant 0 : index
    %c0_4 = arith.constant 0 : index
    %4 = vector.load %arg0[%3, %c0_3, %c0_4] : memref<8x8x384xf32, #tpu.memory_space<vmem>>, vector<1x8x384xf32>
    %5 = vector.shape_cast %4 : vector<1x8x384xf32> to vector<8x384xf32>
    %cst_5 = arith.constant dense<0.000000e+00> : vector<8x384xf32>
    %6 = tpu.matmul %2, %0, %cst_5 {dimension_numbers = #tpu.dot_dimension_numbers<[1], [0], [0], [1], [0, 0, 1, 1], [], []>} : vector<8x128xf32>, vector<128x384xf32>, vector<8x384xf32> -> vector<8x384xf32>
    %7 = vector.broadcast %1 : vector<1x384xf32> to vector<8x384xf32>
    %8 = arith.addf %6, %7 : vector<8x384xf32>
    %9 = vector.extract_strided_slice %5 {offsets = [0, 0], sizes = [8, 128], strides = [1, 1]} : vector<8x384xf32> to vector<8x128xf32>
    %10 = vector.extract_strided_slice %8 {offsets = [0, 0], sizes = [8, 128], strides = [1, 1]} : vector<8x384xf32> to vector<8x128xf32>
    %11 = arith.addf %9, %10 : vector<8x128xf32>
    %12 = arith.negf %11 : vector<8x128xf32>
    %13 = math.exp %12 : vector<8x128xf32>
    %cst_6 = arith.constant 1.000000e+00 : f32
    %14 = vector.broadcast %cst_6 : f32 to vector<8x128xf32>
    %15 = arith.addf %14, %13 : vector<8x128xf32>
    %16 = arith.divf %14, %15 : vector<8x128xf32>
    %17 = vector.extract_strided_slice %5 {offsets = [0, 128], sizes = [8, 128], strides = [1, 1]} : vector<8x384xf32> to vector<8x128xf32>
    %18 = vector.extract_strided_slice %8 {offsets = [0, 128], sizes = [8, 128], strides = [1, 1]} : vector<8x384xf32> to vector<8x128xf32>
    %19 = arith.addf %17, %18 : vector<8x128xf32>
    %20 = arith.negf %19 : vector<8x128xf32>
    %21 = math.exp %20 : vector<8x128xf32>
    %cst_7 = arith.constant 1.000000e+00 : f32
    %22 = vector.broadcast %cst_7 : f32 to vector<8x128xf32>
    %23 = arith.addf %22, %21 : vector<8x128xf32>
    %24 = arith.divf %22, %23 : vector<8x128xf32>
    %25 = vector.extract_strided_slice %5 {offsets = [0, 256], sizes = [8, 128], strides = [1, 1]} : vector<8x384xf32> to vector<8x128xf32>
    %26 = vector.extract_strided_slice %8 {offsets = [0, 256], sizes = [8, 128], strides = [1, 1]} : vector<8x384xf32> to vector<8x128xf32>
    %27 = arith.mulf %16, %26 : vector<8x128xf32>
    %28 = arith.addf %25, %27 : vector<8x128xf32>
    %29 = math.tanh %28 : vector<8x128xf32>
    %cst_8 = arith.constant 1.000000e+00 : f32
    %30 = vector.broadcast %cst_8 : f32 to vector<8x128xf32>
    %31 = arith.subf %30, %24 : vector<8x128xf32>
    %32 = arith.mulf %31, %29 : vector<8x128xf32>
    %33 = arith.mulf %24, %2 : vector<8x128xf32>
    %34 = arith.addf %32, %33 : vector<8x128xf32>
    %c1_i32 = arith.constant 1 : i32
    %35 = arith.index_cast %c1_i32 : i32 to index
    %c0_9 = arith.constant 0 : index
    %c0_10 = arith.constant 0 : index
    %36 = vector.load %arg0[%35, %c0_9, %c0_10] : memref<8x8x384xf32, #tpu.memory_space<vmem>>, vector<1x8x384xf32>
    %37 = vector.shape_cast %36 : vector<1x8x384xf32> to vector<8x384xf32>
    %cst_11 = arith.constant dense<0.000000e+00> : vector<8x384xf32>
    %38 = tpu.matmul %34, %0, %cst_11 {dimension_numbers = #tpu.dot_dimension_numbers<[1], [0], [0], [1], [0, 0, 1, 1], [], []>} : vector<8x128xf32>, vector<128x384xf32>, vector<8x384xf32> -> vector<8x384xf32>
    %39 = vector.broadcast %1 : vector<1x384xf32> to vector<8x384xf32>
    %40 = arith.addf %38, %39 : vector<8x384xf32>
    %41 = vector.extract_strided_slice %37 {offsets = [0, 0], sizes = [8, 128], strides = [1, 1]} : vector<8x384xf32> to vector<8x128xf32>
    %42 = vector.extract_strided_slice %40 {offsets = [0, 0], sizes = [8, 128], strides = [1, 1]} : vector<8x384xf32> to vector<8x128xf32>
    %43 = arith.addf %41, %42 : vector<8x128xf32>
    %44 = arith.negf %43 : vector<8x128xf32>
    %45 = math.exp %44 : vector<8x128xf32>
    %cst_12 = arith.constant 1.000000e+00 : f32
    %46 = vector.broadcast %cst_12 : f32 to vector<8x128xf32>
    %47 = arith.addf %46, %45 : vector<8x128xf32>
    %48 = arith.divf %46, %47 : vector<8x128xf32>
    %49 = vector.extract_strided_slice %37 {offsets = [0, 128], sizes = [8, 128], strides = [1, 1]} : vector<8x384xf32> to vector<8x128xf32>
    %50 = vector.extract_strided_slice %40 {offsets = [0, 128], sizes = [8, 128], strides = [1, 1]} : vector<8x384xf32> to vector<8x128xf32>
    %51 = arith.addf %49, %50 : vector<8x128xf32>
    %52 = arith.negf %51 : vector<8x128xf32>
    %53 = math.exp %52 : vector<8x128xf32>
    %cst_13 = arith.constant 1.000000e+00 : f32
    %54 = vector.broadcast %cst_13 : f32 to vector<8x128xf32>
    %55 = arith.addf %54, %53 : vector<8x128xf32>
    %56 = arith.divf %54, %55 : vector<8x128xf32>
    %57 = vector.extract_strided_slice %37 {offsets = [0, 256], sizes = [8, 128], strides = [1, 1]} : vector<8x384xf32> to vector<8x128xf32>
    %58 = vector.extract_strided_slice %40 {offsets = [0, 256], sizes = [8, 128], strides = [1, 1]} : vector<8x384xf32> to vector<8x128xf32>
    %59 = arith.mulf %48, %58 : vector<8x128xf32>
    %60 = arith.addf %57, %59 : vector<8x128xf32>
    %61 = math.tanh %60 : vector<8x128xf32>
    %cst_14 = arith.constant 1.000000e+00 : f32
    %62 = vector.broadcast %cst_14 : f32 to vector<8x128xf32>
    %63 = arith.subf %62, %56 : vector<8x128xf32>
    %64 = arith.mulf %63, %61 : vector<8x128xf32>
    %65 = arith.mulf %56, %34 : vector<8x128xf32>
    %66 = arith.addf %64, %65 : vector<8x128xf32>
    %c2_i32 = arith.constant 2 : i32
    %67 = arith.index_cast %c2_i32 : i32 to index
    %c0_15 = arith.constant 0 : index
    %c0_16 = arith.constant 0 : index
    %68 = vector.load %arg0[%67, %c0_15, %c0_16] : memref<8x8x384xf32, #tpu.memory_space<vmem>>, vector<1x8x384xf32>
    %69 = vector.shape_cast %68 : vector<1x8x384xf32> to vector<8x384xf32>
    %cst_17 = arith.constant dense<0.000000e+00> : vector<8x384xf32>
    %70 = tpu.matmul %66, %0, %cst_17 {dimension_numbers = #tpu.dot_dimension_numbers<[1], [0], [0], [1], [0, 0, 1, 1], [], []>} : vector<8x128xf32>, vector<128x384xf32>, vector<8x384xf32> -> vector<8x384xf32>
    %71 = vector.broadcast %1 : vector<1x384xf32> to vector<8x384xf32>
    %72 = arith.addf %70, %71 : vector<8x384xf32>
    %73 = vector.extract_strided_slice %69 {offsets = [0, 0], sizes = [8, 128], strides = [1, 1]} : vector<8x384xf32> to vector<8x128xf32>
    %74 = vector.extract_strided_slice %72 {offsets = [0, 0], sizes = [8, 128], strides = [1, 1]} : vector<8x384xf32> to vector<8x128xf32>
    %75 = arith.addf %73, %74 : vector<8x128xf32>
    %76 = arith.negf %75 : vector<8x128xf32>
    %77 = math.exp %76 : vector<8x128xf32>
    %cst_18 = arith.constant 1.000000e+00 : f32
    %78 = vector.broadcast %cst_18 : f32 to vector<8x128xf32>
    %79 = arith.addf %78, %77 : vector<8x128xf32>
    %80 = arith.divf %78, %79 : vector<8x128xf32>
    %81 = vector.extract_strided_slice %69 {offsets = [0, 128], sizes = [8, 128], strides = [1, 1]} : vector<8x384xf32> to vector<8x128xf32>
    %82 = vector.extract_strided_slice %72 {offsets = [0, 128], sizes = [8, 128], strides = [1, 1]} : vector<8x384xf32> to vector<8x128xf32>
    %83 = arith.addf %81, %82 : vector<8x128xf32>
    %84 = arith.negf %83 : vector<8x128xf32>
    %85 = math.exp %84 : vector<8x128xf32>
    %cst_19 = arith.constant 1.000000e+00 : f32
    %86 = vector.broadcast %cst_19 : f32 to vector<8x128xf32>
    %87 = arith.addf %86, %85 : vector<8x128xf32>
    %88 = arith.divf %86, %87 : vector<8x128xf32>
    %89 = vector.extract_strided_slice %69 {offsets = [0, 256], sizes = [8, 128], strides = [1, 1]} : vector<8x384xf32> to vector<8x128xf32>
    %90 = vector.extract_strided_slice %72 {offsets = [0, 256], sizes = [8, 128], strides = [1, 1]} : vector<8x384xf32> to vector<8x128xf32>
    %91 = arith.mulf %80, %90 : vector<8x128xf32>
    %92 = arith.addf %89, %91 : vector<8x128xf32>
    %93 = math.tanh %92 : vector<8x128xf32>
    %cst_20 = arith.constant 1.000000e+00 : f32
    %94 = vector.broadcast %cst_20 : f32 to vector<8x128xf32>
    %95 = arith.subf %94, %88 : vector<8x128xf32>
    %96 = arith.mulf %95, %93 : vector<8x128xf32>
    %97 = arith.mulf %88, %66 : vector<8x128xf32>
    %98 = arith.addf %96, %97 : vector<8x128xf32>
    %c3_i32 = arith.constant 3 : i32
    %99 = arith.index_cast %c3_i32 : i32 to index
    %c0_21 = arith.constant 0 : index
    %c0_22 = arith.constant 0 : index
    %100 = vector.load %arg0[%99, %c0_21, %c0_22] : memref<8x8x384xf32, #tpu.memory_space<vmem>>, vector<1x8x384xf32>
    %101 = vector.shape_cast %100 : vector<1x8x384xf32> to vector<8x384xf32>
    %cst_23 = arith.constant dense<0.000000e+00> : vector<8x384xf32>
    %102 = tpu.matmul %98, %0, %cst_23 {dimension_numbers = #tpu.dot_dimension_numbers<[1], [0], [0], [1], [0, 0, 1, 1], [], []>} : vector<8x128xf32>, vector<128x384xf32>, vector<8x384xf32> -> vector<8x384xf32>
    %103 = vector.broadcast %1 : vector<1x384xf32> to vector<8x384xf32>
    %104 = arith.addf %102, %103 : vector<8x384xf32>
    %105 = vector.extract_strided_slice %101 {offsets = [0, 0], sizes = [8, 128], strides = [1, 1]} : vector<8x384xf32> to vector<8x128xf32>
    %106 = vector.extract_strided_slice %104 {offsets = [0, 0], sizes = [8, 128], strides = [1, 1]} : vector<8x384xf32> to vector<8x128xf32>
    %107 = arith.addf %105, %106 : vector<8x128xf32>
    %108 = arith.negf %107 : vector<8x128xf32>
    %109 = math.exp %108 : vector<8x128xf32>
    %cst_24 = arith.constant 1.000000e+00 : f32
    %110 = vector.broadcast %cst_24 : f32 to vector<8x128xf32>
    %111 = arith.addf %110, %109 : vector<8x128xf32>
    %112 = arith.divf %110, %111 : vector<8x128xf32>
    %113 = vector.extract_strided_slice %101 {offsets = [0, 128], sizes = [8, 128], strides = [1, 1]} : vector<8x384xf32> to vector<8x128xf32>
    %114 = vector.extract_strided_slice %104 {offsets = [0, 128], sizes = [8, 128], strides = [1, 1]} : vector<8x384xf32> to vector<8x128xf32>
    %115 = arith.addf %113, %114 : vector<8x128xf32>
    %116 = arith.negf %115 : vector<8x128xf32>
    %117 = math.exp %116 : vector<8x128xf32>
    %cst_25 = arith.constant 1.000000e+00 : f32
    %118 = vector.broadcast %cst_25 : f32 to vector<8x128xf32>
    %119 = arith.addf %118, %117 : vector<8x128xf32>
    %120 = arith.divf %118, %119 : vector<8x128xf32>
    %121 = vector.extract_strided_slice %101 {offsets = [0, 256], sizes = [8, 128], strides = [1, 1]} : vector<8x384xf32> to vector<8x128xf32>
    %122 = vector.extract_strided_slice %104 {offsets = [0, 256], sizes = [8, 128], strides = [1, 1]} : vector<8x384xf32> to vector<8x128xf32>
    %123 = arith.mulf %112, %122 : vector<8x128xf32>
    %124 = arith.addf %121, %123 : vector<8x128xf32>
    %125 = math.tanh %124 : vector<8x128xf32>
    %cst_26 = arith.constant 1.000000e+00 : f32
    %126 = vector.broadcast %cst_26 : f32 to vector<8x128xf32>
    %127 = arith.subf %126, %120 : vector<8x128xf32>
    %128 = arith.mulf %127, %125 : vector<8x128xf32>
    %129 = arith.mulf %120, %98 : vector<8x128xf32>
    %130 = arith.addf %128, %129 : vector<8x128xf32>
    %c4_i32 = arith.constant 4 : i32
    %131 = arith.index_cast %c4_i32 : i32 to index
    %c0_27 = arith.constant 0 : index
    %c0_28 = arith.constant 0 : index
    %132 = vector.load %arg0[%131, %c0_27, %c0_28] : memref<8x8x384xf32, #tpu.memory_space<vmem>>, vector<1x8x384xf32>
    %133 = vector.shape_cast %132 : vector<1x8x384xf32> to vector<8x384xf32>
    %cst_29 = arith.constant dense<0.000000e+00> : vector<8x384xf32>
    %134 = tpu.matmul %130, %0, %cst_29 {dimension_numbers = #tpu.dot_dimension_numbers<[1], [0], [0], [1], [0, 0, 1, 1], [], []>} : vector<8x128xf32>, vector<128x384xf32>, vector<8x384xf32> -> vector<8x384xf32>
    %135 = vector.broadcast %1 : vector<1x384xf32> to vector<8x384xf32>
    %136 = arith.addf %134, %135 : vector<8x384xf32>
    %137 = vector.extract_strided_slice %133 {offsets = [0, 0], sizes = [8, 128], strides = [1, 1]} : vector<8x384xf32> to vector<8x128xf32>
    %138 = vector.extract_strided_slice %136 {offsets = [0, 0], sizes = [8, 128], strides = [1, 1]} : vector<8x384xf32> to vector<8x128xf32>
    %139 = arith.addf %137, %138 : vector<8x128xf32>
    %140 = arith.negf %139 : vector<8x128xf32>
    %141 = math.exp %140 : vector<8x128xf32>
    %cst_30 = arith.constant 1.000000e+00 : f32
    %142 = vector.broadcast %cst_30 : f32 to vector<8x128xf32>
    %143 = arith.addf %142, %141 : vector<8x128xf32>
    %144 = arith.divf %142, %143 : vector<8x128xf32>
    %145 = vector.extract_strided_slice %133 {offsets = [0, 128], sizes = [8, 128], strides = [1, 1]} : vector<8x384xf32> to vector<8x128xf32>
    %146 = vector.extract_strided_slice %136 {offsets = [0, 128], sizes = [8, 128], strides = [1, 1]} : vector<8x384xf32> to vector<8x128xf32>
    %147 = arith.addf %145, %146 : vector<8x128xf32>
    %148 = arith.negf %147 : vector<8x128xf32>
    %149 = math.exp %148 : vector<8x128xf32>
    %cst_31 = arith.constant 1.000000e+00 : f32
    %150 = vector.broadcast %cst_31 : f32 to vector<8x128xf32>
    %151 = arith.addf %150, %149 : vector<8x128xf32>
    %152 = arith.divf %150, %151 : vector<8x128xf32>
    %153 = vector.extract_strided_slice %133 {offsets = [0, 256], sizes = [8, 128], strides = [1, 1]} : vector<8x384xf32> to vector<8x128xf32>
    %154 = vector.extract_strided_slice %136 {offsets = [0, 256], sizes = [8, 128], strides = [1, 1]} : vector<8x384xf32> to vector<8x128xf32>
    %155 = arith.mulf %144, %154 : vector<8x128xf32>
    %156 = arith.addf %153, %155 : vector<8x128xf32>
    %157 = math.tanh %156 : vector<8x128xf32>
    %cst_32 = arith.constant 1.000000e+00 : f32
    %158 = vector.broadcast %cst_32 : f32 to vector<8x128xf32>
    %159 = arith.subf %158, %152 : vector<8x128xf32>
    %160 = arith.mulf %159, %157 : vector<8x128xf32>
    %161 = arith.mulf %152, %130 : vector<8x128xf32>
    %162 = arith.addf %160, %161 : vector<8x128xf32>
    %c5_i32 = arith.constant 5 : i32
    %163 = arith.index_cast %c5_i32 : i32 to index
    %c0_33 = arith.constant 0 : index
    %c0_34 = arith.constant 0 : index
    %164 = vector.load %arg0[%163, %c0_33, %c0_34] : memref<8x8x384xf32, #tpu.memory_space<vmem>>, vector<1x8x384xf32>
    %165 = vector.shape_cast %164 : vector<1x8x384xf32> to vector<8x384xf32>
    %cst_35 = arith.constant dense<0.000000e+00> : vector<8x384xf32>
    %166 = tpu.matmul %162, %0, %cst_35 {dimension_numbers = #tpu.dot_dimension_numbers<[1], [0], [0], [1], [0, 0, 1, 1], [], []>} : vector<8x128xf32>, vector<128x384xf32>, vector<8x384xf32> -> vector<8x384xf32>
    %167 = vector.broadcast %1 : vector<1x384xf32> to vector<8x384xf32>
    %168 = arith.addf %166, %167 : vector<8x384xf32>
    %169 = vector.extract_strided_slice %165 {offsets = [0, 0], sizes = [8, 128], strides = [1, 1]} : vector<8x384xf32> to vector<8x128xf32>
    %170 = vector.extract_strided_slice %168 {offsets = [0, 0], sizes = [8, 128], strides = [1, 1]} : vector<8x384xf32> to vector<8x128xf32>
    %171 = arith.addf %169, %170 : vector<8x128xf32>
    %172 = arith.negf %171 : vector<8x128xf32>
    %173 = math.exp %172 : vector<8x128xf32>
    %cst_36 = arith.constant 1.000000e+00 : f32
    %174 = vector.broadcast %cst_36 : f32 to vector<8x128xf32>
    %175 = arith.addf %174, %173 : vector<8x128xf32>
    %176 = arith.divf %174, %175 : vector<8x128xf32>
    %177 = vector.extract_strided_slice %165 {offsets = [0, 128], sizes = [8, 128], strides = [1, 1]} : vector<8x384xf32> to vector<8x128xf32>
    %178 = vector.extract_strided_slice %168 {offsets = [0, 128], sizes = [8, 128], strides = [1, 1]} : vector<8x384xf32> to vector<8x128xf32>
    %179 = arith.addf %177, %178 : vector<8x128xf32>
    %180 = arith.negf %179 : vector<8x128xf32>
    %181 = math.exp %180 : vector<8x128xf32>
    %cst_37 = arith.constant 1.000000e+00 : f32
    %182 = vector.broadcast %cst_37 : f32 to vector<8x128xf32>
    %183 = arith.addf %182, %181 : vector<8x128xf32>
    %184 = arith.divf %182, %183 : vector<8x128xf32>
    %185 = vector.extract_strided_slice %165 {offsets = [0, 256], sizes = [8, 128], strides = [1, 1]} : vector<8x384xf32> to vector<8x128xf32>
    %186 = vector.extract_strided_slice %168 {offsets = [0, 256], sizes = [8, 128], strides = [1, 1]} : vector<8x384xf32> to vector<8x128xf32>
    %187 = arith.mulf %176, %186 : vector<8x128xf32>
    %188 = arith.addf %185, %187 : vector<8x128xf32>
    %189 = math.tanh %188 : vector<8x128xf32>
    %cst_38 = arith.constant 1.000000e+00 : f32
    %190 = vector.broadcast %cst_38 : f32 to vector<8x128xf32>
    %191 = arith.subf %190, %184 : vector<8x128xf32>
    %192 = arith.mulf %191, %189 : vector<8x128xf32>
    %193 = arith.mulf %184, %162 : vector<8x128xf32>
    %194 = arith.addf %192, %193 : vector<8x128xf32>
    %c6_i32 = arith.constant 6 : i32
    %195 = arith.index_cast %c6_i32 : i32 to index
    %c0_39 = arith.constant 0 : index
    %c0_40 = arith.constant 0 : index
    %196 = vector.load %arg0[%195, %c0_39, %c0_40] : memref<8x8x384xf32, #tpu.memory_space<vmem>>, vector<1x8x384xf32>
    %197 = vector.shape_cast %196 : vector<1x8x384xf32> to vector<8x384xf32>
    %cst_41 = arith.constant dense<0.000000e+00> : vector<8x384xf32>
    %198 = tpu.matmul %194, %0, %cst_41 {dimension_numbers = #tpu.dot_dimension_numbers<[1], [0], [0], [1], [0, 0, 1, 1], [], []>} : vector<8x128xf32>, vector<128x384xf32>, vector<8x384xf32> -> vector<8x384xf32>
    %199 = vector.broadcast %1 : vector<1x384xf32> to vector<8x384xf32>
    %200 = arith.addf %198, %199 : vector<8x384xf32>
    %201 = vector.extract_strided_slice %197 {offsets = [0, 0], sizes = [8, 128], strides = [1, 1]} : vector<8x384xf32> to vector<8x128xf32>
    %202 = vector.extract_strided_slice %200 {offsets = [0, 0], sizes = [8, 128], strides = [1, 1]} : vector<8x384xf32> to vector<8x128xf32>
    %203 = arith.addf %201, %202 : vector<8x128xf32>
    %204 = arith.negf %203 : vector<8x128xf32>
    %205 = math.exp %204 : vector<8x128xf32>
    %cst_42 = arith.constant 1.000000e+00 : f32
    %206 = vector.broadcast %cst_42 : f32 to vector<8x128xf32>
    %207 = arith.addf %206, %205 : vector<8x128xf32>
    %208 = arith.divf %206, %207 : vector<8x128xf32>
    %209 = vector.extract_strided_slice %197 {offsets = [0, 128], sizes = [8, 128], strides = [1, 1]} : vector<8x384xf32> to vector<8x128xf32>
    %210 = vector.extract_strided_slice %200 {offsets = [0, 128], sizes = [8, 128], strides = [1, 1]} : vector<8x384xf32> to vector<8x128xf32>
    %211 = arith.addf %209, %210 : vector<8x128xf32>
    %212 = arith.negf %211 : vector<8x128xf32>
    %213 = math.exp %212 : vector<8x128xf32>
    %cst_43 = arith.constant 1.000000e+00 : f32
    %214 = vector.broadcast %cst_43 : f32 to vector<8x128xf32>
    %215 = arith.addf %214, %213 : vector<8x128xf32>
    %216 = arith.divf %214, %215 : vector<8x128xf32>
    %217 = vector.extract_strided_slice %197 {offsets = [0, 256], sizes = [8, 128], strides = [1, 1]} : vector<8x384xf32> to vector<8x128xf32>
    %218 = vector.extract_strided_slice %200 {offsets = [0, 256], sizes = [8, 128], strides = [1, 1]} : vector<8x384xf32> to vector<8x128xf32>
    %219 = arith.mulf %208, %218 : vector<8x128xf32>
    %220 = arith.addf %217, %219 : vector<8x128xf32>
    %221 = math.tanh %220 : vector<8x128xf32>
    %cst_44 = arith.constant 1.000000e+00 : f32
    %222 = vector.broadcast %cst_44 : f32 to vector<8x128xf32>
    %223 = arith.subf %222, %216 : vector<8x128xf32>
    %224 = arith.mulf %223, %221 : vector<8x128xf32>
    %225 = arith.mulf %216, %194 : vector<8x128xf32>
    %226 = arith.addf %224, %225 : vector<8x128xf32>
    %c7_i32 = arith.constant 7 : i32
    %227 = arith.index_cast %c7_i32 : i32 to index
    %c0_45 = arith.constant 0 : index
    %c0_46 = arith.constant 0 : index
    %228 = vector.load %arg0[%227, %c0_45, %c0_46] : memref<8x8x384xf32, #tpu.memory_space<vmem>>, vector<1x8x384xf32>
    %229 = vector.shape_cast %228 : vector<1x8x384xf32> to vector<8x384xf32>
    %cst_47 = arith.constant dense<0.000000e+00> : vector<8x384xf32>
    %230 = tpu.matmul %226, %0, %cst_47 {dimension_numbers = #tpu.dot_dimension_numbers<[1], [0], [0], [1], [0, 0, 1, 1], [], []>} : vector<8x128xf32>, vector<128x384xf32>, vector<8x384xf32> -> vector<8x384xf32>
    %231 = vector.broadcast %1 : vector<1x384xf32> to vector<8x384xf32>
    %232 = arith.addf %230, %231 : vector<8x384xf32>
    %233 = vector.extract_strided_slice %229 {offsets = [0, 0], sizes = [8, 128], strides = [1, 1]} : vector<8x384xf32> to vector<8x128xf32>
    %234 = vector.extract_strided_slice %232 {offsets = [0, 0], sizes = [8, 128], strides = [1, 1]} : vector<8x384xf32> to vector<8x128xf32>
    %235 = arith.addf %233, %234 : vector<8x128xf32>
    %236 = arith.negf %235 : vector<8x128xf32>
    %237 = math.exp %236 : vector<8x128xf32>
    %cst_48 = arith.constant 1.000000e+00 : f32
    %238 = vector.broadcast %cst_48 : f32 to vector<8x128xf32>
    %239 = arith.addf %238, %237 : vector<8x128xf32>
    %240 = arith.divf %238, %239 : vector<8x128xf32>
    %241 = vector.extract_strided_slice %229 {offsets = [0, 128], sizes = [8, 128], strides = [1, 1]} : vector<8x384xf32> to vector<8x128xf32>
    %242 = vector.extract_strided_slice %232 {offsets = [0, 128], sizes = [8, 128], strides = [1, 1]} : vector<8x384xf32> to vector<8x128xf32>
    %243 = arith.addf %241, %242 : vector<8x128xf32>
    %244 = arith.negf %243 : vector<8x128xf32>
    %245 = math.exp %244 : vector<8x128xf32>
    %cst_49 = arith.constant 1.000000e+00 : f32
    %246 = vector.broadcast %cst_49 : f32 to vector<8x128xf32>
    %247 = arith.addf %246, %245 : vector<8x128xf32>
    %248 = arith.divf %246, %247 : vector<8x128xf32>
    %249 = vector.extract_strided_slice %229 {offsets = [0, 256], sizes = [8, 128], strides = [1, 1]} : vector<8x384xf32> to vector<8x128xf32>
    %250 = vector.extract_strided_slice %232 {offsets = [0, 256], sizes = [8, 128], strides = [1, 1]} : vector<8x384xf32> to vector<8x128xf32>
    %251 = arith.mulf %240, %250 : vector<8x128xf32>
    %252 = arith.addf %249, %251 : vector<8x128xf32>
    %253 = math.tanh %252 : vector<8x128xf32>
    %cst_50 = arith.constant 1.000000e+00 : f32
    %254 = vector.broadcast %cst_50 : f32 to vector<8x128xf32>
    %255 = arith.subf %254, %248 : vector<8x128xf32>
    %256 = arith.mulf %255, %253 : vector<8x128xf32>
    %257 = arith.mulf %248, %226 : vector<8x128xf32>
    %258 = arith.addf %256, %257 : vector<8x128xf32>
    %c8_i32 = arith.constant 8 : i32
    %c0_51 = arith.constant 0 : index
    %c0_52 = arith.constant 0 : index
    %259 = vector.load %arg3[%c0_51, %c0_52] : memref<128x128xf32, #tpu.memory_space<vmem>>, vector<128x128xf32>
    %cst_53 = arith.constant dense<0.000000e+00> : vector<8x128xf32>
    %260 = tpu.matmul %258, %259, %cst_53 {dimension_numbers = #tpu.dot_dimension_numbers<[1], [0], [0], [1], [0, 0, 1, 1], [], []>} : vector<8x128xf32>, vector<128x128xf32>, vector<8x128xf32> -> vector<8x128xf32>
    %c0_54 = arith.constant 0 : index
    %c0_55 = arith.constant 0 : index
    %261 = vector.load %arg4[%c0_54, %c0_55] : memref<1x128xf32, #tpu.memory_space<vmem>>, vector<1x128xf32>
    %262 = vector.broadcast %261 : vector<1x128xf32> to vector<8x128xf32>
    %263 = arith.addf %260, %262 : vector<8x128xf32>
    %c0_56 = arith.constant 0 : index
    %c0_57 = arith.constant 0 : index
    %264 = vector.load %arg5[%c0_56, %c0_57] : memref<8x128xf32, #tpu.memory_space<vmem>>, vector<8x128xf32>
    tpu.vector_store %arg5[%c0_56, %c0_57], %263 {strides = array<i32>} : memref<8x128xf32, #tpu.memory_space<vmem>>, vector<8x128xf32>,
    return
  }
}

</mosaic_0001>

<bundles_post_ra>
// kernel: tpu_custom_call.1
= control target key start
LH: loop header
LB: loop body
LE: loop exit
PB: predicated region body
PF: predicated region fallthrough
CT: control target
= control target key end

     0   :  { %10 = vsyncpa [#allocation3], 0  ;;  %s3144_s0 = inlined_call_operand.hbm [shape: f32[8,8,384], index: 0, kind: input, shape index: {}]   ;;  %s3145_s1 = inlined_call_operand.hbm [shape: f32[128,384], index: 1, kind: input, shape index: {}]   ;;  %s3146_s2 = inlined_call_operand.vmem [shape: f32[1,384], index: 2, kind: input, shape index: {}]   ;;  %s3147_s3 = inlined_call_operand.hbm [shape: f32[128,128], index: 3, kind: input, shape index: {}]   ;;  %s3148_s4 = inlined_call_operand.vmem [shape: f32[1,128], index: 4, kind: input, shape index: {}]   ;;  %s3149_s5 = inlined_call_operand.hbm [shape: f32[8,128], index: 5, kind: output, shape index: {}]  }
   0x1   :  { %11 = vsyncpa [#allocation6], 0 }
   0x2   :  { %12 = vsyncpa [#allocation4], 0  ;;  %s2273_s18 = smov [#allocation5]   ;;  %s2274_s20 = smov [#allocation2]  }
   0x3   :  { %s30_s19 = sshll.u32 %s2273_s18, 4  ;;  %s18_s21 = sshll.u32 %s2274_s20, 4  ;;  %s31_s19 = int_to_ptr.vmem [resolvable:$true] %s30_s19  ;;  %s19_s21 = int_to_ptr.vmem [resolvable:$true] %s18_s21 }
   0x4   :  { %s2195_s22 = scalar_lea.vmem %s31_s19, 6144  ;;  %p2200_p1 = scmp.lt.s32.totalorder %s31_s19, %s31_s19 }
   0x5   :  { %p2196_p0 = scmp.ne.s32.totalorder %s31_s19, %s2195_s22  ;;  %p2201_p2 = scmp.lt.s32.totalorder %s2195_s22, %s2195_s22 }
   0x7   :  { %p2202_p3 = por %p2201_p2, %p2200_p1 }
   0x9   :  { %p2203_p4 = pnand %p2202_p3, %p2196_p0 }
   0xb   :  { %2206 = shalt.err (!%p2203_p4)
}
   0xc   :  { %s2275_s23 = smov 384   ;;  %s2276_s24 = smov 24  }
   0xd   :  { %36 = dma.hbm_to_vmem [thread:$0]  %s3145_s1, 6144, %s31_s19, [#allocation6], %s2275_s23, %s2275_s23, %s2276_s24  }
   0xe   :  { %s2215_s27 = scalar_lea.vmem %s19_s21, 3072  ;;  %p2220_p6 = scmp.lt.s32.totalorder %s19_s21, %s19_s21 }
   0xf   :  { %p2216_p5 = scmp.ne.s32.totalorder %s19_s21, %s2215_s27  ;;  %p2221_p7 = scmp.lt.s32.totalorder %s2215_s27, %s2215_s27 }
  0x11   :  { %p2222_p8 = por %p2221_p7, %p2220_p6 }
  0x13   :  { %p2223_p9 = pnand %p2222_p8, %p2216_p5 }
  0x15   :  { %2226 = shalt.err (!%p2223_p9)
}
  0x16   :  { %24 = dma.hbm_to_vmem [thread:$0]  %s3144_s0, 3072, %s19_s21, [#allocation3], %s2275_s23, %s2275_s23, %s2276_s24  }
  0x17   :  { %s2277_s30 = smov [#allocation7]  }
  0x18   :  { %s44_s6 = sshll.u32 %s2277_s30, 4  ;;  %s45_s6 = int_to_ptr.vmem [resolvable:$true] %s44_s6 }
  0x19   :  { %s2235_s7 = scalar_lea.vmem %s45_s6, 2048  ;;  %p2240_p11 = scmp.lt.s32.totalorder %s45_s6, %s45_s6 }
  0x1a   :  { %p2236_p10 = scmp.ne.s32.totalorder %s45_s6, %s2235_s7  ;;  %p2241_p12 = scmp.lt.s32.totalorder %s2235_s7, %s2235_s7 }
  0x1c   :  { %p2242_p13 = por %p2241_p12, %p2240_p11 }
  0x1e   :  { %p2243_p0 = pnand %p2242_p13, %p2236_p10 }
  0x20   :  { %2246 = shalt.err (!%p2243_p0)
}
  0x21   :  { %s2278_s1 = smov 128   ;;  %s2279_s8 = smov 8  }
  0x22   :  { %50 = dma.hbm_to_vmem [thread:$0]  %s3147_s3, 2048, %s45_s6, [#allocation6], %s2278_s1, %s2278_s1, %s2279_s8  }
  0x23   :  { %2267 = dma.done.wait [#allocation3], 3072  }
  0x24   :  { %2268 = vsyncadd [#allocation3], 4294964224 }
  0x25   :  { %2269 = dma.done.wait [#allocation6], 8192  }
  0x26   :  { %2270 = vsyncadd [#allocation6], 4294959104  ;;  %v3150_v0 = vmov 0.0   ;;  %vm2281_vm0 = vmmov 0   ;;  %v2326_v1 = vld [vmem:[#allocation5 + $0x170] sm:$0xff]  ;;  %v2328_v2 = vld [vmem:[#allocation5 + $0x168] sm:$0xff]  ;;  %v115_v49 = vlaneseq }
  0x27   :  { %194 = vmatprep.mubr.f32.mxu0 %v3150_v0  ;;  %1734 = vmatprep.subr.mxu1 %v3150_v0  ;;  %3175 = vst [vmem:[#allocation12_spill] sm:$0xff] %v2326_v1  ;;  %v2330_v3 = vld [vmem:[#allocation5 + $0x158] sm:$0xff]  ;;  %v2333_v4 = vld [vmem:[#allocation5 + $0x150] sm:$0xff]  ;;  %v2336_v5 = vld [vmem:[#allocation5 + $0x140] sm:$0xff]  ;;  %s2282_s12 = smov [#allocation8]  }
  0x28   :  { %1766 = vmatprep.mubr.msk.f32.mxu1 %vm2281_vm0, %v3150_v0  ;;  %130 = vmatprep.subr.mxu0 %v2326_v1  ;;  %v2339_v6 = vld [vmem:[#allocation5 + $0x138] sm:$0xff]  ;;  %v2342_v7 = vld [vmem:[#allocation5 + $0x128] sm:$0xff]  ;;  %v2345_v8 = vld [vmem:[#allocation5 + $0x120] sm:$0xff]  ;;  %v116_v50 = vshrl.u32 %v115_v49, 7  ;;  %s1554_s13 = sshll.u32 %s2282_s12, 4  ;;  %s1555_s13 = int_to_ptr.vmem [resolvable:$true] %s1554_s13 }
  0x29   :  { %131 = vmatpush1.msra.mxu0 %v2328_v2  ;;  %v2348_v9 = vld [vmem:[#allocation5 + $0x110] sm:$0xff]  ;;  %v2351_v10 = vld [vmem:[#allocation5 + $0x108] sm:$0xff]  ;;  %v2354_v11 = vld [vmem:[#allocation5 + $0xf8] sm:$0xff]  ;;  %s2247_s14 = scalar_lea.vmem %s1555_s13, 128  ;;  %p2252_p2 = scmp.lt.s32.totalorder %s1555_s13, %s1555_s13 }
  0x2a   :  { %132 = vmatprep.subr.mxu0 %v2330_v3  ;;  %v2357_v12 = vld [vmem:[#allocation5 + $0xf0] sm:$0xff]  ;;  %v2360_v13 = vld [vmem:[#allocation5 + $0xe0] sm:$0xff]  ;;  %v2362_v14 = vld [vmem:[#allocation5 + $0x178] sm:$0xff]  ;;  %v117_v51 = vsub.s32 0, %v116_v50  ;;  %v121_v54 = vsub.s32 1, %v116_v50  ;;  %p2248_p1 = scmp.ne.s32.totalorder %s1555_s13, %s2247_s14  ;;  %p2253_p3 = scmp.lt.s32.totalorder %s2247_s14, %s2247_s14 }
  0x2b   :  { %133 = vmatpush1.msra.mxu0 %v2333_v4  ;;  %v2365_v15 = vld [vmem:[#allocation5 + $0xd8] sm:$0xff]  ;;  %1735 = vmatpush3.msra.mxu1 %v2362_v14  ;;  %v2368_v16 = vld [vmem:[#allocation5 + $0x160] sm:$0xff]  ;;  %v2371_v17 = vld [vmem:[#allocation5 + $0xc8] sm:$0xff] }
  0x2c   :  { %134 = vmatprep.subr.mxu0 %v2336_v5  ;;  %1736 = vmatprep.subr.mxu1 %v3150_v0  ;;  %v2374_v18 = vld [vmem:[#allocation5 + $0x148] sm:$0xff]  ;;  %v2377_v19 = vld [vmem:[#allocation5 + $0xc0] sm:$0xff]  ;;  %v2381_v20 = vld [vmem:[#allocation5 + $0xb0] sm:$0xff]  ;;  %p2254_p4 = por %p2253_p3, %p2252_p2 }
  0x2d   :  { %135 = vmatpush1.msra.mxu0 %v2339_v6  ;;  %1737 = vmatpush3.msra.mxu1 %v2368_v16  ;;  %v2384_v21 = vld [vmem:[#allocation5 + $0x130] sm:$0xff]  ;;  %v2387_v22 = vld [vmem:[#allocation5 + $0xa8] sm:$0xff]  ;;  %v2391_v23 = vld [vmem:[#allocation5 + $0x98] sm:$0xff] }
  0x2e   :  { %136 = vmatprep.subr.mxu0 %v2342_v7  ;;  %1738 = vmatprep.subr.mxu1 %v3150_v0  ;;  %v2394_v24 = vld [vmem:[#allocation5 + $0x118] sm:$0xff]  ;;  %v2397_v25 = vld [vmem:[#allocation5 + $0x90] sm:$0xff]  ;;  %v2401_v26 = vld [vmem:[#allocation5 + $0x80] sm:$0xff]  ;;  %p2255_p5 = pnand %p2254_p4, %p2248_p1 }
  0x2f   :  { %137 = vmatpush1.msra.mxu0 %v2345_v8  ;;  %1739 = vmatpush3.msra.mxu1 %v2374_v18  ;;  %v2404_v27 = vld [vmem:[#allocation5 + $0x100] sm:$0xff]  ;;  %v2407_v28 = vld [vmem:[#allocation5 + $0x78] sm:$0xff]  ;;  %v2411_v29 = vld [vmem:[#allocation5 + $0x68] sm:$0xff] }
  0x30   :  { %138 = vmatprep.subr.mxu0 %v2348_v9  ;;  %1740 = vmatprep.subr.mxu1 %v3150_v0  ;;  %v2414_v30 = vld [vmem:[#allocation5 + $0xe8] sm:$0xff]  ;;  %v2417_v31 = vld [vmem:[#allocation5 + $0x60] sm:$0xff]  ;;  %v2421_v32 = vld [vmem:[#allocation5 + $0x50] sm:$0xff] }
  0x31   :  { %139 = vmatpush1.msra.mxu0 %v2351_v10  ;;  %1741 = vmatpush3.msra.mxu1 %v2384_v21  ;;  %v2424_v33 = vld [vmem:[#allocation5 + $0xd0] sm:$0xff]  ;;  %v2427_v34 = vld [vmem:[#allocation5 + $0x48] sm:$0xff]  ;;  %v2431_v35 = vld [vmem:[#allocation5 + $0x38] sm:$0xff] }
  0x32   :  { %140 = vmatprep.subr.mxu0 %v2354_v11  ;;  %1742 = vmatprep.subr.mxu1 %v3150_v0  ;;  %v2434_v36 = vld [vmem:[#allocation5 + $0xb8] sm:$0xff]  ;;  %v2437_v37 = vld [vmem:[#allocation5 + $0x30] sm:$0xff]  ;;  %v2441_v38 = vld [vmem:[#allocation5 + $0x20] sm:$0xff] }
  0x33   :  { %141 = vmatpush1.msra.mxu0 %v2357_v12  ;;  %1743 = vmatpush3.msra.mxu1 %v2394_v24  ;;  %3176 = vst [vmem:[#allocation13_spill] sm:$0xff] %v2441_v38  ;;  %v2444_v39 = vld [vmem:[#allocation5 + $0xa0] sm:$0xff]  ;;  %v2447_v40 = vld [vmem:[#allocation5 + $0x18] sm:$0xff]  ;;  %v2451_v41 = vld [vmem:[#allocation5 + $0x8] sm:$0xff] }
  0x34   :  { %142 = vmatprep.subr.mxu0 %v2360_v13  ;;  %1744 = vmatprep.subr.mxu1 %v3150_v0  ;;  %3177 = vst [vmem:[#allocation14_spill] sm:$0xff] %v2447_v40  ;;  %3178 = vst [vmem:[#allocation15_spill] sm:$0xff] %v2451_v41  ;;  %v2454_v42 = vld [vmem:[#allocation5 + $0x88] sm:$0xff]  ;;  %v2457_v43 = vld [vmem:[#allocation5] sm:$0xff] }
  0x35   :  { %143 = vmatpush1.msra.mxu0 %v2365_v15  ;;  %1745 = vmatpush3.msra.mxu1 %v2404_v27  ;;  %3179 = vst [vmem:[#allocation16_spill] sm:$0xff] %v2457_v43  ;;  %v2462_v44 = vld [vmem:[#allocation5 + $0x70] sm:$0xff]  ;;  %v2468_v45 = vld [vmem:[#allocation5 + $0x58] sm:$0xff]  ;;  %v2473_v46 = vld [vmem:[#allocation5 + $0x40] sm:$0xff] }
  0x36   :  { %144 = vmatprep.subr.mxu0 %v2371_v17  ;;  %1746 = vmatprep.subr.mxu1 %v3150_v0  ;;  %v2479_v47 = vld [vmem:[#allocation5 + $0x28] sm:$0xff]  ;;  %v2485_v48 = vld [vmem:[#allocation5 + $0x10] sm:$0xff]  ;;  %v110_v52 = vld [vmem:[%s3146_s2] sm:$0x7] }
  0x37   :  { %145 = vmatpush1.msra.mxu0 %v2377_v19  ;;  %1747 = vmatpush3.msra.mxu1 %v2414_v30  ;;  %3180 = vst [vmem:[#allocation17_spill] sm:$0xff] %v2479_v47  ;;  %3181 = vst [vmem:[#allocation18_spill] sm:$0xff] %v2485_v48  ;;  %v2559_v53 = vrot.slane %v110_v52, %v117_v51  ;;  %v111_v55 = vld [vmem:[#allocation2] sm:$0xff]  ;;  %v2562_v58 = vrot.slane %v110_v52, %v121_v54  ;;  %v112_v63 = vld [vmem:[#allocation2 + $0x8] sm:$0xff] }
  0x38   :  { %146 = vmatprep.subr.mxu0 %v2381_v20  ;;  %1748 = vmatprep.subr.mxu1 %v3150_v0 }
  0x39   :  { %147 = vmatpush1.msra.mxu0 %v2387_v22  ;;  %1749 = vmatpush3.msra.mxu1 %v2424_v33  ;;  %3182 = vst [vmem:[#allocation19_spill] sm:$0xff] %v2559_v53 }
  0x3a   :  { %148 = vmatprep.subr.mxu0 %v2391_v23  ;;  %1750 = vmatprep.subr.mxu1 %v3150_v0 }
  0x3b   :  { %149 = vmatpush1.msra.mxu0 %v2397_v25  ;;  %1751 = vmatpush3.msra.mxu1 %v2434_v36 }
  0x3c   :  { %150 = vmatprep.subr.mxu0 %v2401_v26  ;;  %1752 = vmatprep.subr.mxu1 %v3150_v0 }
  0x3d   :  { %151 = vmatpush1.msra.mxu0 %v2407_v28  ;;  %1753 = vmatpush3.msra.mxu1 %v2444_v39 }
  0x3e   :  { %152 = vmatprep.subr.mxu0 %v2411_v29  ;;  %1754 = vmatprep.subr.mxu1 %v3150_v0 }
  0x3f   :  { %153 = vmatpush1.msra.mxu0 %v2417_v31  ;;  %1755 = vmatpush3.msra.mxu1 %v2454_v42 }
  0x40   :  { %154 = vmatprep.subr.mxu0 %v2421_v32  ;;  %1756 = vmatprep.subr.mxu1 %v3150_v0 }
  0x41   :  { %155 = vmatpush1.msra.mxu0 %v2427_v34  ;;  %1757 = vmatpush3.msra.mxu1 %v2462_v44 }
  0x42   :  { %156 = vmatprep.subr.mxu0 %v2431_v35  ;;  %1758 = vmatprep.subr.mxu1 %v3150_v0 }
  0x43   :  { %157 = vmatpush1.msra.mxu0 %v2437_v37  ;;  %1759 = vmatpush3.msra.mxu1 %v2468_v45 }
  0x44   :  { %158 = vmatprep.subr.mxu0 %v2441_v38  ;;  %1760 = vmatprep.subr.mxu1 %v3150_v0 }
  0x45   :  { %159 = vmatpush1.msra.mxu0 %v2447_v40  ;;  %1761 = vmatpush3.msra.mxu1 %v2473_v46 }
  0x46   :  { %160 = vmatprep.subr.mxu0 %v2451_v41  ;;  %1762 = vmatprep.subr.mxu1 %v3150_v0 }
  0x47   :  { %161 = vmatpush1.msra.mxu0 %v2457_v43  ;;  %1763 = vmatpush3.msra.mxu1 %v2479_v47 }
  0x48   :  { %195 = vmatmul.mubr.f32.vlgmr.msra.gmra.mxu0 %v3150_v0  ;;  %296 = vmatprep.subr.mxu0 %v2326_v1 }
  0x49   :  { %297 = vmatpush1.msra.mxu0 %v2328_v2  ;;  %1764 = vmatprep.subr.mxu1 %v3150_v0 }
  0x4a   :  { %298 = vmatprep.subr.mxu0 %v2330_v3  ;;  %1765 = vmatpush3.msra.mxu1 %v2485_v48 }
  0x4b   :  { %299 = vmatpush1.msra.mxu0 %v2333_v4  ;;  %1767 = vmatmul.mubr.f32.vlgmr.msra.gmra.mxu1 %v3150_v0 }
  0x4c   :  { %300 = vmatprep.subr.mxu0 %v2336_v5  ;;  %1769 = vmatprep.subr.mxu1 %v3150_v0 }
  0x4d   :  { %301 = vmatpush1.msra.mxu0 %v2339_v6  ;;  %1770 = vmatpush3.msra.mxu1 %v2362_v14 }
  0x4e   :  { %302 = vmatprep.subr.mxu0 %v2342_v7  ;;  %1771 = vmatprep.subr.mxu1 %v3150_v0 }
  0x4f   :  { %303 = vmatpush1.msra.mxu0 %v2345_v8  ;;  %1772 = vmatpush3.msra.mxu1 %v2368_v16 }
  0x50   :  { %304 = vmatprep.subr.mxu0 %v2348_v9  ;;  %1773 = vmatprep.subr.mxu1 %v3150_v0 }
  0x51   :  { %305 = vmatpush1.msra.mxu0 %v2351_v10  ;;  %1774 = vmatpush3.msra.mxu1 %v2374_v18 }
  0x52   :  { %306 = vmatprep.subr.mxu0 %v2354_v11  ;;  %1775 = vmatprep.subr.mxu1 %v3150_v0 }
  0x53   :  { %307 = vmatpush1.msra.mxu0 %v2357_v12  ;;  %1776 = vmatpush3.msra.mxu1 %v2384_v21 }
  0x54   :  { %308 = vmatprep.subr.mxu0 %v2360_v13  ;;  %1777 = vmatprep.subr.mxu1 %v3150_v0 }
  0x55   :  { %309 = vmatpush1.msra.mxu0 %v2365_v15  ;;  %1778 = vmatpush3.msra.mxu1 %v2394_v24 }
  0x56   :  { %310 = vmatprep.subr.mxu0 %v2371_v17  ;;  %1779 = vmatprep.subr.mxu1 %v3150_v0 }
  0x57   :  { %311 = vmatpush1.msra.mxu0 %v2377_v19  ;;  %1780 = vmatpush3.msra.mxu1 %v2404_v27 }
  0x58   :  { %312 = vmatprep.subr.mxu0 %v2381_v20  ;;  %1781 = vmatprep.subr.mxu1 %v3150_v0 }
  0x59   :  { %313 = vmatpush1.msra.mxu0 %v2387_v22  ;;  %1782 = vmatpush3.msra.mxu1 %v2414_v30 }
  0x5a   :  { %314 = vmatprep.subr.mxu0 %v2391_v23  ;;  %1783 = vmatprep.subr.mxu1 %v3150_v0 }
  0x5b   :  { %315 = vmatpush1.msra.mxu0 %v2397_v25  ;;  %1784 = vmatpush3.msra.mxu1 %v2424_v33 }
  0x5c   :  { %316 = vmatprep.subr.mxu0 %v2401_v26  ;;  %1785 = vmatprep.subr.mxu1 %v3150_v0 }
  0x5d   :  { %317 = vmatpush1.msra.mxu0 %v2407_v28  ;;  %1786 = vmatpush3.msra.mxu1 %v2434_v36 }
  0x5e   :  { %318 = vmatprep.subr.mxu0 %v2411_v29  ;;  %1787 = vmatprep.subr.mxu1 %v3150_v0 }
  0x5f   :  { %319 = vmatpush1.msra.mxu0 %v2417_v31  ;;  %1788 = vmatpush3.msra.mxu1 %v2444_v39 }
  0x60   :  { %320 = vmatprep.subr.mxu0 %v2421_v32  ;;  %1789 = vmatprep.subr.mxu1 %v3150_v0 }
  0x61   :  { %321 = vmatpush1.msra.mxu0 %v2427_v34  ;;  %1790 = vmatpush3.msra.mxu1 %v2454_v42 }
  0x62   :  { %322 = vmatprep.subr.mxu0 %v2431_v35  ;;  %1791 = vmatprep.subr.mxu1 %v3150_v0 }
  0x63   :  { %323 = vmatpush1.msra.mxu0 %v2437_v37  ;;  %1792 = vmatpush3.msra.mxu1 %v2462_v44 }
  0x64   :  { %324 = vmatprep.subr.mxu0 %v2441_v38  ;;  %1793 = vmatprep.subr.mxu1 %v3150_v0 }
  0x65   :  { %325 = vmatpush1.msra.mxu0 %v2447_v40  ;;  %1794 = vmatpush3.msra.mxu1 %v2468_v45 }
  0x66   :  { %326 = vmatprep.subr.mxu0 %v2451_v41  ;;  %360 = vmatprep.mubr.f32.mxu0 %v3150_v0  ;;  %v125_v41 = vsub.s32 2, %v116_v50  ;;  %v3186_v50 = vld [vmem:[#allocation16_spill] sm:$0xff] }
  0x67   :  { %327 = vmatpush1.msra.mxu0 %v2457_v43  ;;  %1795 = vmatprep.subr.mxu1 %v3150_v0 }
  0x68   :  { %1801 = vmatprep.mubr.msk.f32.mxu1 %vm2281_vm0, %v3150_v0  ;;  %1796 = vmatpush3.msra.mxu1 %v2473_v46 }
  0x69   :  { %462 = vmatprep.subr.mxu0 %v2326_v1  ;;  %1797 = vmatprep.subr.mxu1 %v3150_v0 }
  0x6a   :  { %1798 = vmatpush3.msra.mxu1 %v2479_v47  ;;  %v2565_v47 = vrot.slane %v110_v52, %v125_v41  ;;  %v3184_v41 = vld [vmem:[#allocation17_spill] sm:$0xff]  ;;  %v3187_v52 = vld [vmem:[#allocation18_spill] sm:$0xff] }
  0x6b   :  { %1799 = vmatprep.subr.mxu1 %v3150_v0 }
  0x6c   :  { %1800 = vmatpush3.msra.mxu1 %v2485_v48 }
  0x6d   :  { %1804 = vmatprep.subr.mxu1 %v3150_v0 }
 0x108   :  { %v196_v56 = vpop.f32.mrf.mxu0 }
 0x109   :  { %v197_v57 = vadd.f32 %v196_v56, %v2559_v53 }
 0x10a   :  { %v198_v59 = vpop.f32.mrf.mxu0 }
 0x10b   :  { %v271_v60 = vadd.f32 %v197_v57, %v111_v55  ;;  %v199_v62 = vadd.f32 %v198_v59, %v2562_v58  ;;  %v267_v0 = vpop.f32.mrf.mxu1 }
 0x10c   :  { %v268_v55 = vadd.f32 %v267_v0, %v2565_v47  ;;  %v3183_v0 = vmov 0.0  }
 0x10d   :  { %v1564_v61 = vmul.f32 -1.442695, %v271_v60  ;;  %v278_v49 = vadd.f32 %v199_v62, %v112_v63  ;;  %v1768_v1 = vpop.f32.mrf.mxu1  ;;  %v113_v60 = vld [vmem:[#allocation2 + $0x10] sm:$0xff] }
 0x10f   :  { %2059 = vpow2.f32 %v1564_v61  ;;  %v1565_v48 = vmul.f32 -1.442695, %v278_v49 }
 0x111   :  { %2061 = vpow2.f32 %v1565_v48 }
 0x11c   :  { %v2060_v51 = vpop.eup %2059 }
 0x11d   :  { %v275_v43 = vadd.f32 1.0, %v2060_v51 }
 0x11e   :  { %v2062_v54 = vpop.eup %2061 }
 0x11f   :  { %2063 = vrcp.f32 %v275_v43  ;;  %v282_v56 = vadd.f32 1.0, %v2062_v54  ;;  %v3185_v43 = vld [vmem:[#allocation15_spill] sm:$0xff]  ;;  %v3188_v54 = vld [vmem:[#allocation12_spill] sm:$0xff] }
 0x121   :  { %2065 = vrcp.f32 %v282_v56  ;;  %v293_v56 = vld [vmem:[#allocation2 + $0x18] sm:$0xff] }
 0x12c   :  { %v2064_v57 = vpop.eup %2063 }
 0x12d   :  { %v285_v59 = vmul.f32 %v2064_v57, %v268_v55 }
 0x12e   :  { %v2066_v62 = vpop.eup %2065 }
 0x12f   :  { %v286_v61 = vadd.f32 %v285_v59, %v113_v60  ;;  %v288_v1 = vsub.f32 1.0, %v2066_v62  ;;  %v290_v49 = vmul.f32 0.0, %v2066_v62 }
 0x131   :  { %2067 = vtanh.f32 %v286_v61 }
 0x13e   :  { %v2068_v63 = vpop.eup %2067 }
 0x13f   :  { %v289_v48 = vmul.f32 %v2068_v63, %v288_v1 }
 0x141   :  { %v2568_v51 = vadd.f32 %v290_v49, %v289_v48  ;;  %v294_v48 = vld [vmem:[#allocation2 + $0x20] sm:$0xff] }
 0x143   :  { %361 = vmatmul.mubr.f32.vlgmr.msra.gmra.mxu0 %v2568_v51  ;;  %1802 = vmatmul.mubr.f32.vlgmr.msra.gmra.mxu1 %v2568_v51 }
 0x144   :  { %463 = vmatpush1.msra.mxu0 %v2328_v2  ;;  %1805 = vmatpush3.msra.mxu1 %v2362_v14 }
 0x145   :  { %464 = vmatprep.subr.mxu0 %v2330_v3  ;;  %1806 = vmatprep.subr.mxu1 %v3183_v0 }
 0x146   :  { %465 = vmatpush1.msra.mxu0 %v2333_v4  ;;  %1807 = vmatpush3.msra.mxu1 %v2368_v16 }
 0x147   :  { %466 = vmatprep.subr.mxu0 %v2336_v5  ;;  %1808 = vmatprep.subr.mxu1 %v3183_v0 }
 0x148   :  { %467 = vmatpush1.msra.mxu0 %v2339_v6  ;;  %1809 = vmatpush3.msra.mxu1 %v2374_v18 }
 0x149   :  { %468 = vmatprep.subr.mxu0 %v2342_v7  ;;  %1810 = vmatprep.subr.mxu1 %v3183_v0 }
 0x14a   :  { %469 = vmatpush1.msra.mxu0 %v2345_v8  ;;  %1811 = vmatpush3.msra.mxu1 %v2384_v21 }
 0x14b   :  { %470 = vmatprep.subr.mxu0 %v2348_v9  ;;  %1812 = vmatprep.subr.mxu1 %v3183_v0 }
 0x14c   :  { %471 = vmatpush1.msra.mxu0 %v2351_v10  ;;  %1813 = vmatpush3.msra.mxu1 %v2394_v24 }
 0x14d   :  { %472 = vmatprep.subr.mxu0 %v2354_v11  ;;  %1814 = vmatprep.subr.mxu1 %v3183_v0 }
 0x14e   :  { %473 = vmatpush1.msra.mxu0 %v2357_v12  ;;  %1815 = vmatpush3.msra.mxu1 %v2404_v27 }
 0x14f   :  { %474 = vmatprep.subr.mxu0 %v2360_v13  ;;  %1816 = vmatprep.subr.mxu1 %v3183_v0 }
 0x150   :  { %475 = vmatpush1.msra.mxu0 %v2365_v15  ;;  %1817 = vmatpush3.msra.mxu1 %v2414_v30 }
 0x151   :  { %476 = vmatprep.subr.mxu0 %v2371_v17  ;;  %1818 = vmatprep.subr.mxu1 %v3183_v0 }
 0x152   :  { %477 = vmatpush1.msra.mxu0 %v2377_v19  ;;  %1819 = vmatpush3.msra.mxu1 %v2424_v33 }
 0x153   :  { %478 = vmatprep.subr.mxu0 %v2381_v20  ;;  %1820 = vmatprep.subr.mxu1 %v3183_v0 }
 0x154   :  { %479 = vmatpush1.msra.mxu0 %v2387_v22  ;;  %1821 = vmatpush3.msra.mxu1 %v2434_v36 }
 0x155   :  { %480 = vmatprep.subr.mxu0 %v2391_v23  ;;  %1822 = vmatprep.subr.mxu1 %v3183_v0 }
 0x156   :  { %481 = vmatpush1.msra.mxu0 %v2397_v25  ;;  %1823 = vmatpush3.msra.mxu1 %v2444_v39 }
 0x157   :  { %482 = vmatprep.subr.mxu0 %v2401_v26  ;;  %1824 = vmatprep.subr.mxu1 %v3183_v0 }
 0x158   :  { %483 = vmatpush1.msra.mxu0 %v2407_v28  ;;  %1825 = vmatpush3.msra.mxu1 %v2454_v42 }
 0x159   :  { %484 = vmatprep.subr.mxu0 %v2411_v29  ;;  %1826 = vmatprep.subr.mxu1 %v3183_v0 }
 0x15a   :  { %485 = vmatpush1.msra.mxu0 %v2417_v31  ;;  %1827 = vmatpush3.msra.mxu1 %v2462_v44 }
 0x15b   :  { %486 = vmatprep.subr.mxu0 %v2421_v32  ;;  %1828 = vmatprep.subr.mxu1 %v3183_v0 }
 0x15c   :  { %487 = vmatpush1.msra.mxu0 %v2427_v34  ;;  %1829 = vmatpush3.msra.mxu1 %v2468_v45 }
 0x15d   :  { %488 = vmatprep.subr.mxu0 %v2431_v35  ;;  %1830 = vmatprep.subr.mxu1 %v3183_v0 }
 0x15e   :  { %489 = vmatpush1.msra.mxu0 %v2437_v37  ;;  %1831 = vmatpush3.msra.mxu1 %v2473_v46 }
 0x15f   :  { %490 = vmatprep.subr.mxu0 %v2441_v38  ;;  %1832 = vmatprep.subr.mxu1 %v3183_v0 }
 0x160   :  { %491 = vmatpush1.msra.mxu0 %v2447_v40  ;;  %1833 = vmatpush3.msra.mxu1 %v3184_v41 }
 0x161   :  { %492 = vmatprep.subr.mxu0 %v3185_v43  ;;  %1834 = vmatprep.subr.mxu1 %v3183_v0 }
 0x162   :  { %493 = vmatpush1.msra.mxu0 %v3186_v50  ;;  %526 = vmatprep.mubr.f32.mxu0 %v3183_v0 }
 0x163   :  { %1835 = vmatpush3.msra.mxu1 %v3187_v52  ;;  %1836 = vmatprep.mubr.msk.f32.mxu1 %vm2281_vm0, %v3183_v0 }
 0x164   :  { %628 = vmatprep.subr.mxu0 %v3188_v54  ;;  %1839 = vmatprep.subr.mxu1 %v3183_v0 }
 0x203   :  { %v362_v55 = vpop.f32.mrf.mxu0  ;;  %v433_v57 = vpop.f32.mrf.mxu1 }
 0x204   :  { %v363_v60 = vadd.f32 %v362_v55, %v2559_v53  ;;  %v434_v40 = vadd.f32 %v433_v57, %v2565_v47  ;;  %v295_v55 = vld [vmem:[#allocation2 + $0x28] sm:$0xff] }
 0x205   :  { %v364_v59 = vpop.f32.mrf.mxu0  ;;  %v1803_v61 = vpop.f32.mrf.mxu1 }
 0x206   :  { %v437_v62 = vadd.f32 %v363_v60, %v293_v56  ;;  %v365_v63 = vadd.f32 %v364_v59, %v2562_v58 }
 0x208   :  { %v1566_v1 = vmul.f32 -1.442695, %v437_v62  ;;  %v444_v49 = vadd.f32 %v365_v63, %v294_v48  ;;  %v3196_v48 = vld [vmem:[#allocation19_spill] sm:$0xff] }
 0x20a   :  { %2069 = vpow2.f32 %v1566_v1  ;;  %v1567_v52 = vmul.f32 -1.442695, %v444_v49 }
 0x20c   :  { %2071 = vpow2.f32 %v1567_v52 }
 0x217   :  { %v2070_v50 = vpop.eup %2069 }
 0x218   :  { %v441_v54 = vadd.f32 1.0, %v2070_v50  ;;  %v3195_v50 = vld [vmem:[#allocation12_spill] sm:$0xff] }
 0x219   :  { %v2072_v43 = vpop.eup %2071 }
 0x21a   :  { %2073 = vrcp.f32 %v441_v54  ;;  %v448_v41 = vadd.f32 1.0, %v2072_v43  ;;  %v3194_v43 = vld [vmem:[#allocation18_spill] sm:$0xff]  ;;  %v459_v54 = vld [vmem:[#allocation2 + $0x30] sm:$0xff] }
 0x21c   :  { %2075 = vrcp.f32 %v448_v41  ;;  %v3193_v41 = vld [vmem:[#allocation16_spill] sm:$0xff] }
 0x227   :  { %v2074_v38 = vpop.eup %2073 }
 0x228   :  { %v451_v53 = vmul.f32 %v2074_v38, %v434_v40  ;;  %v3189_v38 = vld [vmem:[#allocation13_spill] sm:$0xff]  ;;  %v3190_v40 = vld [vmem:[#allocation14_spill] sm:$0xff] }
 0x229   :  { %v2076_v60 = vpop.eup %2075 }
 0x22a   :  { %v452_v56 = vadd.f32 %v451_v53, %v295_v55  ;;  %v454_v59 = vsub.f32 1.0, %v2076_v60  ;;  %v456_v1 = vmul.f32 %v2076_v60, %v2568_v51  ;;  %v3191_v53 = vld [vmem:[#allocation17_spill] sm:$0xff]  ;;  %v3192_v51 = vld [vmem:[#allocation15_spill] sm:$0xff] }
 0x22c   :  { %2077 = vtanh.f32 %v452_v56 }
 0x239   :  { %v2078_v61 = vpop.eup %2077 }
 0x23a   :  { %v455_v62 = vmul.f32 %v2078_v61, %v454_v59 }
 0x23c   :  { %v2643_v52 = vadd.f32 %v456_v1, %v455_v62  ;;  %v460_v62 = vld [vmem:[#allocation2 + $0x38] sm:$0xff] }
 0x23e   :  { %527 = vmatmul.mubr.f32.vlgmr.msra.gmra.mxu0 %v2643_v52  ;;  %1837 = vmatmul.mubr.f32.vlgmr.msra.gmra.mxu1 %v2643_v52 }
 0x23f   :  { %629 = vmatpush1.msra.mxu0 %v2328_v2  ;;  %1840 = vmatpush3.msra.mxu1 %v2362_v14 }
 0x240   :  { %630 = vmatprep.subr.mxu0 %v2330_v3  ;;  %1841 = vmatprep.subr.mxu1 %v3183_v0 }
 0x241   :  { %631 = vmatpush1.msra.mxu0 %v2333_v4  ;;  %1842 = vmatpush3.msra.mxu1 %v2368_v16 }
 0x242   :  { %632 = vmatprep.subr.mxu0 %v2336_v5  ;;  %1843 = vmatprep.subr.mxu1 %v3183_v0 }
 0x243   :  { %633 = vmatpush1.msra.mxu0 %v2339_v6  ;;  %1844 = vmatpush3.msra.mxu1 %v2374_v18 }
 0x244   :  { %634 = vmatprep.subr.mxu0 %v2342_v7  ;;  %1845 = vmatprep.subr.mxu1 %v3183_v0 }
 0x245   :  { %635 = vmatpush1.msra.mxu0 %v2345_v8  ;;  %1846 = vmatpush3.msra.mxu1 %v2384_v21 }
 0x246   :  { %636 = vmatprep.subr.mxu0 %v2348_v9  ;;  %1847 = vmatprep.subr.mxu1 %v3183_v0 }
 0x247   :  { %637 = vmatpush1.msra.mxu0 %v2351_v10  ;;  %1848 = vmatpush3.msra.mxu1 %v2394_v24 }
 0x248   :  { %638 = vmatprep.subr.mxu0 %v2354_v11  ;;  %1849 = vmatprep.subr.mxu1 %v3183_v0 }
 0x249   :  { %639 = vmatpush1.msra.mxu0 %v2357_v12  ;;  %1850 = vmatpush3.msra.mxu1 %v2404_v27 }
 0x24a   :  { %640 = vmatprep.subr.mxu0 %v2360_v13  ;;  %1851 = vmatprep.subr.mxu1 %v3183_v0 }
 0x24b   :  { %641 = vmatpush1.msra.mxu0 %v2365_v15  ;;  %1852 = vmatpush3.msra.mxu1 %v2414_v30 }
 0x24c   :  { %642 = vmatprep.subr.mxu0 %v2371_v17  ;;  %1853 = vmatprep.subr.mxu1 %v3183_v0 }
 0x24d   :  { %643 = vmatpush1.msra.mxu0 %v2377_v19  ;;  %1854 = vmatpush3.msra.mxu1 %v2424_v33 }
 0x24e   :  { %644 = vmatprep.subr.mxu0 %v2381_v20  ;;  %1855 = vmatprep.subr.mxu1 %v3183_v0 }
 0x24f   :  { %645 = vmatpush1.msra.mxu0 %v2387_v22  ;;  %1856 = vmatpush3.msra.mxu1 %v2434_v36 }
 0x250   :  { %646 = vmatprep.subr.mxu0 %v2391_v23  ;;  %1857 = vmatprep.subr.mxu1 %v3183_v0 }
 0x251   :  { %647 = vmatpush1.msra.mxu0 %v2397_v25  ;;  %1858 = vmatpush3.msra.mxu1 %v2444_v39 }
 0x252   :  { %648 = vmatprep.subr.mxu0 %v2401_v26  ;;  %1859 = vmatprep.subr.mxu1 %v3183_v0 }
 0x253   :  { %649 = vmatpush1.msra.mxu0 %v2407_v28  ;;  %1860 = vmatpush3.msra.mxu1 %v2454_v42 }
 0x254   :  { %650 = vmatprep.subr.mxu0 %v2411_v29  ;;  %1861 = vmatprep.subr.mxu1 %v3183_v0 }
 0x255   :  { %651 = vmatpush1.msra.mxu0 %v2417_v31  ;;  %1862 = vmatpush3.msra.mxu1 %v2462_v44 }
 0x256   :  { %652 = vmatprep.subr.mxu0 %v2421_v32  ;;  %1863 = vmatprep.subr.mxu1 %v3183_v0 }
 0x257   :  { %653 = vmatpush1.msra.mxu0 %v2427_v34  ;;  %1864 = vmatpush3.msra.mxu1 %v2468_v45 }
 0x258   :  { %654 = vmatprep.subr.mxu0 %v2431_v35  ;;  %1865 = vmatprep.subr.mxu1 %v3183_v0 }
 0x259   :  { %655 = vmatpush1.msra.mxu0 %v2437_v37  ;;  %1866 = vmatpush3.msra.mxu1 %v2473_v46 }
 0x25a   :  { %656 = vmatprep.subr.mxu0 %v3189_v38  ;;  %1867 = vmatprep.subr.mxu1 %v3183_v0 }
 0x25b   :  { %657 = vmatpush1.msra.mxu0 %v3190_v40  ;;  %1868 = vmatpush3.msra.mxu1 %v3191_v53 }
 0x25c   :  { %658 = vmatprep.subr.mxu0 %v3192_v51  ;;  %1869 = vmatprep.subr.mxu1 %v3183_v0 }
 0x25d   :  { %659 = vmatpush1.msra.mxu0 %v3193_v41  ;;  %692 = vmatprep.mubr.f32.mxu0 %v3183_v0 }
 0x25e   :  { %1870 = vmatpush3.msra.mxu1 %v3194_v43  ;;  %1871 = vmatprep.mubr.msk.f32.mxu1 %vm2281_vm0, %v3183_v0 }
 0x25f   :  { %794 = vmatprep.subr.mxu0 %v3195_v50  ;;  %1874 = vmatprep.subr.mxu1 %v3183_v0 }
 0x2fe   :  { %v528_v57 = vpop.f32.mrf.mxu0  ;;  %v599_v63 = vpop.f32.mrf.mxu1 }
 0x2ff   :  { %v529_v49 = vadd.f32 %v528_v57, %v3196_v48  ;;  %v600_v40 = vadd.f32 %v599_v63, %v2565_v47  ;;  %v461_v57 = vld [vmem:[#allocation2 + $0x40] sm:$0xff] }
 0x300   :  { %v530_v55 = vpop.f32.mrf.mxu0  ;;  %v1838_v56 = vpop.f32.mrf.mxu1 }
 0x301   :  { %v603_v60 = vadd.f32 %v529_v49, %v459_v54  ;;  %v531_v61 = vadd.f32 %v530_v55, %v2562_v58 }
 0x303   :  { %v1568_v59 = vmul.f32 -1.442695, %v603_v60  ;;  %v610_v1 = vadd.f32 %v531_v61, %v460_v62 }
 0x305   :  { %2079 = vpow2.f32 %v1568_v59  ;;  %v1569_v43 = vmul.f32 -1.442695, %v610_v1 }
 0x307   :  { %2081 = vpow2.f32 %v1569_v43 }
 0x312   :  { %v2080_v41 = vpop.eup %2079 }
 0x313   :  { %v607_v50 = vadd.f32 1.0, %v2080_v41 }
 0x314   :  { %v2082_v51 = vpop.eup %2081 }
 0x315   :  { %2083 = vrcp.f32 %v607_v50  ;;  %v614_v53 = vadd.f32 1.0, %v2082_v51  ;;  %v627_v50 = vld [vmem:[#allocation2 + $0x58] sm:$0xff] }
 0x317   :  { %2085 = vrcp.f32 %v614_v53 }
 0x322   :  { %v2084_v38 = vpop.eup %2083 }
 0x323   :  { %v617_v48 = vmul.f32 %v2084_v38, %v600_v40 }
 0x324   :  { %v2086_v49 = vpop.eup %2085 }
 0x325   :  { %v618_v54 = vadd.f32 %v617_v48, %v461_v57  ;;  %v620_v55 = vsub.f32 1.0, %v2086_v49  ;;  %v622_v59 = vmul.f32 %v2086_v49, %v2643_v52 }
 0x327   :  { %2087 = vtanh.f32 %v618_v54 }
 0x334   :  { %v2088_v56 = vpop.eup %2087 }
 0x335   :  { %v621_v60 = vmul.f32 %v2088_v56, %v620_v55  ;;  %v2797_v55 = vld [vmem:[#allocation5 + $0x168] sm:$0xff]  ;;  %v2801_v56 = vld [vmem:[#allocation5 + $0x158] sm:$0xff] }
 0x337   :  { %v2718_v43 = vadd.f32 %v622_v59, %v621_v60  ;;  %v2805_v60 = vld [vmem:[#allocation5 + $0x150] sm:$0xff]  ;;  %v2809_v59 = vld [vmem:[#allocation5 + $0x140] sm:$0xff] }
 0x339   :  { %693 = vmatmul.mubr.f32.vlgmr.msra.gmra.mxu0 %v2718_v43  ;;  %1872 = vmatmul.mubr.f32.vlgmr.msra.gmra.mxu1 %v2718_v43 }
 0x33a   :  { %795 = vmatpush1.msra.mxu0 %v2328_v2  ;;  %1875 = vmatpush3.msra.mxu1 %v2362_v14  ;;  %v3197_v2 = vld [vmem:[#allocation13_spill] sm:$0xff] }
 0x33b   :  { %796 = vmatprep.subr.mxu0 %v2330_v3  ;;  %1876 = vmatprep.subr.mxu1 %v3183_v0  ;;  %v3198_v3 = vld [vmem:[#allocation14_spill] sm:$0xff] }
 0x33c   :  { %797 = vmatpush1.msra.mxu0 %v2333_v4  ;;  %1877 = vmatpush3.msra.mxu1 %v2368_v16  ;;  %v3199_v4 = vld [vmem:[#allocation17_spill] sm:$0xff] }
 0x33d   :  { %798 = vmatprep.subr.mxu0 %v2336_v5  ;;  %1878 = vmatprep.subr.mxu1 %v3183_v0  ;;  %v3200_v5 = vld [vmem:[#allocation15_spill] sm:$0xff] }
 0x33e   :  { %799 = vmatpush1.msra.mxu0 %v2339_v6  ;;  %1879 = vmatpush3.msra.mxu1 %v2374_v18  ;;  %v3201_v6 = vld [vmem:[#allocation16_spill] sm:$0xff] }
 0x33f   :  { %800 = vmatprep.subr.mxu0 %v2342_v7  ;;  %1880 = vmatprep.subr.mxu1 %v3183_v0  ;;  %v3202_v7 = vld [vmem:[#allocation18_spill] sm:$0xff] }
 0x340   :  { %801 = vmatpush1.msra.mxu0 %v2345_v8  ;;  %1881 = vmatpush3.msra.mxu1 %v2384_v21  ;;  %v3203_v8 = vld [vmem:[#allocation12_spill] sm:$0xff] }
 0x341   :  { %802 = vmatprep.subr.mxu0 %v2348_v9  ;;  %1882 = vmatprep.subr.mxu1 %v3183_v0  ;;  %v625_v9 = vld [vmem:[#allocation2 + $0x48] sm:$0xff] }
 0x342   :  { %803 = vmatpush1.msra.mxu0 %v2351_v10  ;;  %1883 = vmatpush3.msra.mxu1 %v2394_v24 }
 0x343   :  { %804 = vmatprep.subr.mxu0 %v2354_v11  ;;  %1884 = vmatprep.subr.mxu1 %v3183_v0 }
 0x344   :  { %805 = vmatpush1.msra.mxu0 %v2357_v12  ;;  %1885 = vmatpush3.msra.mxu1 %v2404_v27  ;;  %v3204_v12 = vld [vmem:[#allocation19_spill] sm:$0xff] }
 0x345   :  { %806 = vmatprep.subr.mxu0 %v2360_v13  ;;  %1886 = vmatprep.subr.mxu1 %v3183_v0 }
 0x346   :  { %807 = vmatpush1.msra.mxu0 %v2365_v15  ;;  %1887 = vmatpush3.msra.mxu1 %v2414_v30 }
 0x347   :  { %808 = vmatprep.subr.mxu0 %v2371_v17  ;;  %1888 = vmatprep.subr.mxu1 %v3183_v0 }
 0x348   :  { %809 = vmatpush1.msra.mxu0 %v2377_v19  ;;  %1889 = vmatpush3.msra.mxu1 %v2424_v33 }
 0x349   :  { %810 = vmatprep.subr.mxu0 %v2381_v20  ;;  %1890 = vmatprep.subr.mxu1 %v3183_v0 }
 0x34a   :  { %811 = vmatpush1.msra.mxu0 %v2387_v22  ;;  %1891 = vmatpush3.msra.mxu1 %v2434_v36 }
 0x34b   :  { %812 = vmatprep.subr.mxu0 %v2391_v23  ;;  %1892 = vmatprep.subr.mxu1 %v3183_v0  ;;  %v626_v23 = vld [vmem:[#allocation2 + $0x50] sm:$0xff] }
 0x34c   :  { %813 = vmatpush1.msra.mxu0 %v2397_v25  ;;  %1893 = vmatpush3.msra.mxu1 %v2444_v39 }
 0x34d   :  { %814 = vmatprep.subr.mxu0 %v2401_v26  ;;  %1894 = vmatprep.subr.mxu1 %v3183_v0 }
 0x34e   :  { %815 = vmatpush1.msra.mxu0 %v2407_v28  ;;  %1895 = vmatpush3.msra.mxu1 %v2454_v42 }
 0x34f   :  { %816 = vmatprep.subr.mxu0 %v2411_v29  ;;  %1896 = vmatprep.subr.mxu1 %v3183_v0 }
 0x350   :  { %817 = vmatpush1.msra.mxu0 %v2417_v31  ;;  %1897 = vmatpush3.msra.mxu1 %v2462_v44 }
 0x351   :  { %818 = vmatprep.subr.mxu0 %v2421_v32  ;;  %1898 = vmatprep.subr.mxu1 %v3183_v0 }
 0x352   :  { %819 = vmatpush1.msra.mxu0 %v2427_v34  ;;  %1899 = vmatpush3.msra.mxu1 %v2468_v45 }
 0x353   :  { %820 = vmatprep.subr.mxu0 %v2431_v35  ;;  %1900 = vmatprep.subr.mxu1 %v3183_v0 }
 0x354   :  { %821 = vmatpush1.msra.mxu0 %v2437_v37  ;;  %1901 = vmatpush3.msra.mxu1 %v2473_v46 }
 0x355   :  { %822 = vmatprep.subr.mxu0 %v3197_v2  ;;  %1902 = vmatprep.subr.mxu1 %v3183_v0 }
 0x356   :  { %823 = vmatpush1.msra.mxu0 %v3198_v3  ;;  %1903 = vmatpush3.msra.mxu1 %v3199_v4 }
 0x357   :  { %824 = vmatprep.subr.mxu0 %v3200_v5  ;;  %1904 = vmatprep.subr.mxu1 %v3183_v0 }
 0x358   :  { %825 = vmatpush1.msra.mxu0 %v3201_v6  ;;  %858 = vmatprep.mubr.f32.mxu0 %v3183_v0 }
 0x359   :  { %1905 = vmatpush3.msra.mxu1 %v3202_v7  ;;  %1906 = vmatprep.mubr.msk.f32.mxu1 %vm2281_vm0, %v3183_v0 }
 0x35a   :  { %960 = vmatprep.subr.mxu0 %v3203_v8  ;;  %1909 = vmatprep.subr.mxu1 %v3183_v0  ;;  %v2821_v8 = vld [vmem:[#allocation5 + $0x120] sm:$0xff] }
 0x3f9   :  { %v694_v10 = vpop.f32.mrf.mxu0  ;;  %v765_v11 = vpop.f32.mrf.mxu1 }
 0x3fa   :  { %v695_v13 = vadd.f32 %v694_v10, %v3204_v12  ;;  %v766_v51 = vadd.f32 %v765_v11, %v2565_v47  ;;  %v2837_v10 = vld [vmem:[#allocation5 + $0xf0] sm:$0xff]  ;;  %v2845_v11 = vld [vmem:[#allocation5 + $0xd8] sm:$0xff] }
 0x3fb   :  { %v696_v15 = vpop.f32.mrf.mxu0  ;;  %v1873_v17 = vpop.f32.mrf.mxu1 }
 0x3fc   :  { %v769_v19 = vadd.f32 %v695_v13, %v625_v9  ;;  %v697_v22 = vadd.f32 %v696_v15, %v2562_v58  ;;  %v2829_v9 = vld [vmem:[#allocation5 + $0x108] sm:$0xff]  ;;  %v2853_v13 = vld [vmem:[#allocation5 + $0xc0] sm:$0xff]  ;;  %v2869_v17 = vld [vmem:[#allocation5 + $0x90] sm:$0xff] }
 0x3fd   :  { %v2861_v15 = vld [vmem:[#allocation5 + $0xa8] sm:$0xff] }
 0x3fe   :  { %v1570_v20 = vmul.f32 -1.442695, %v769_v19  ;;  %v776_v25 = vadd.f32 %v697_v22, %v626_v23  ;;  %v793_v19 = vld [vmem:[#allocation2 + $0x70] sm:$0xff] }
 0x400   :  { %2089 = vpow2.f32 %v1570_v20  ;;  %v1571_v26 = vmul.f32 -1.442695, %v776_v25 }
 0x402   :  { %2091 = vpow2.f32 %v1571_v26 }
 0x40d   :  { %v2090_v52 = vpop.eup %2089 }
 0x40e   :  { %v773_v38 = vadd.f32 1.0, %v2090_v52 }
 0x40f   :  { %v2092_v40 = vpop.eup %2091 }
 0x410   :  { %2093 = vrcp.f32 %v773_v38  ;;  %v780_v53 = vadd.f32 1.0, %v2092_v40 }
 0x412   :  { %2095 = vrcp.f32 %v780_v53  ;;  %v2915_v53 = vld [vmem:[#allocation5 + $0x178] sm:$0xff] }
 0x41d   :  { %v2094_v41 = vpop.eup %2093 }
 0x41e   :  { %v783_v63 = vmul.f32 %v2094_v41, %v766_v51  ;;  %v2921_v51 = vld [vmem:[#allocation5 + $0x160] sm:$0xff]  ;;  %v2927_v41 = vld [vmem:[#allocation5 + $0x148] sm:$0xff] }
 0x41f   :  { %v2096_v61 = vpop.eup %2095 }
 0x420   :  { %v784_v48 = vadd.f32 %v783_v63, %v627_v50  ;;  %v786_v62 = vsub.f32 1.0, %v2096_v61  ;;  %v788_v54 = vmul.f32 %v2096_v61, %v2718_v43  ;;  %v2813_v43 = vld [vmem:[#allocation5 + $0x138] sm:$0xff]  ;;  %v2933_v50 = vld [vmem:[#allocation5 + $0x130] sm:$0xff]  ;;  %v2951_v61 = vld [vmem:[#allocation5 + $0xe8] sm:$0xff] }
 0x421   :  { %v2939_v63 = vld [vmem:[#allocation5 + $0x118] sm:$0xff] }
 0x422   :  { %2097 = vtanh.f32 %v784_v48  ;;  %v2945_v48 = vld [vmem:[#allocation5 + $0x100] sm:$0xff] }
 0x42f   :  { %v2098_v1 = vpop.eup %2097 }
 0x430   :  { %v787_v57 = vmul.f32 %v2098_v1, %v786_v62  ;;  %v2957_v62 = vld [vmem:[#allocation5 + $0xd0] sm:$0xff]  ;;  %v2963_v1 = vld [vmem:[#allocation5 + $0xb8] sm:$0xff] }
 0x432   :  { %v2793_v49 = vadd.f32 %v788_v54, %v787_v57  ;;  %v2969_v57 = vld [vmem:[#allocation5 + $0xa0] sm:$0xff]  ;;  %v2974_v54 = vld [vmem:[#allocation5 + $0x78] sm:$0xff] }
 0x434   :  { %859 = vmatmul.mubr.f32.vlgmr.msra.gmra.mxu0 %v2793_v49  ;;  %1907 = vmatmul.mubr.f32.vlgmr.msra.gmra.mxu1 %v2793_v49 }
 0x435   :  { %961 = vmatpush1.msra.mxu0 %v2797_v55  ;;  %1910 = vmatpush3.msra.mxu1 %v2362_v14  ;;  %v2817_v14 = vld [vmem:[#allocation5 + $0x128] sm:$0xff] }
 0x436   :  { %962 = vmatprep.subr.mxu0 %v2801_v56  ;;  %1911 = vmatprep.subr.mxu1 %v3183_v0 }
 0x437   :  { %963 = vmatpush1.msra.mxu0 %v2805_v60  ;;  %1912 = vmatpush3.msra.mxu1 %v2368_v16  ;;  %v2825_v16 = vld [vmem:[#allocation5 + $0x110] sm:$0xff] }
 0x438   :  { %964 = vmatprep.subr.mxu0 %v2809_v59  ;;  %1913 = vmatprep.subr.mxu1 %v3183_v0 }
 0x439   :  { %965 = vmatpush1.msra.mxu0 %v2813_v43  ;;  %1914 = vmatpush3.msra.mxu1 %v2374_v18  ;;  %v2833_v18 = vld [vmem:[#allocation5 + $0xf8] sm:$0xff] }
 0x43a   :  { %966 = vmatprep.subr.mxu0 %v2817_v14  ;;  %1915 = vmatprep.subr.mxu1 %v3183_v0 }
 0x43b   :  { %967 = vmatpush1.msra.mxu0 %v2821_v8  ;;  %1916 = vmatpush3.msra.mxu1 %v2384_v21  ;;  %v2841_v21 = vld [vmem:[#allocation5 + $0xe0] sm:$0xff] }
 0x43c   :  { %968 = vmatprep.subr.mxu0 %v2825_v16  ;;  %1917 = vmatprep.subr.mxu1 %v3183_v0 }
 0x43d   :  { %969 = vmatpush1.msra.mxu0 %v2829_v9  ;;  %1918 = vmatpush3.msra.mxu1 %v2394_v24  ;;  %v2849_v24 = vld [vmem:[#allocation5 + $0xc8] sm:$0xff] }
 0x43e   :  { %970 = vmatprep.subr.mxu0 %v2833_v18  ;;  %1919 = vmatprep.subr.mxu1 %v3183_v0 }
 0x43f   :  { %971 = vmatpush1.msra.mxu0 %v2837_v10  ;;  %1920 = vmatpush3.msra.mxu1 %v2404_v27  ;;  %v2857_v27 = vld [vmem:[#allocation5 + $0xb0] sm:$0xff] }
 0x440   :  { %972 = vmatprep.subr.mxu0 %v2841_v21  ;;  %1921 = vmatprep.subr.mxu1 %v3183_v0 }
 0x441   :  { %973 = vmatpush1.msra.mxu0 %v2845_v11  ;;  %1922 = vmatpush3.msra.mxu1 %v2414_v30  ;;  %v2865_v30 = vld [vmem:[#allocation5 + $0x98] sm:$0xff] }
 0x442   :  { %974 = vmatprep.subr.mxu0 %v2849_v24  ;;  %1923 = vmatprep.subr.mxu1 %v3183_v0 }
 0x443   :  { %975 = vmatpush1.msra.mxu0 %v2853_v13  ;;  %1924 = vmatpush3.msra.mxu1 %v2424_v33  ;;  %v2873_v33 = vld [vmem:[#allocation5 + $0x80] sm:$0xff] }
 0x444   :  { %976 = vmatprep.subr.mxu0 %v2857_v27  ;;  %1925 = vmatprep.subr.mxu1 %v3183_v0 }
 0x445   :  { %977 = vmatpush1.msra.mxu0 %v2861_v15  ;;  %1926 = vmatpush3.msra.mxu1 %v2434_v36 }
 0x446   :  { %978 = vmatprep.subr.mxu0 %v2865_v30  ;;  %1927 = vmatprep.subr.mxu1 %v3183_v0 }
 0x447   :  { %979 = vmatpush1.msra.mxu0 %v2869_v17  ;;  %1928 = vmatpush3.msra.mxu1 %v2444_v39 }
 0x448   :  { %980 = vmatprep.subr.mxu0 %v2873_v33  ;;  %1929 = vmatprep.subr.mxu1 %v3183_v0 }
 0x449   :  { %981 = vmatpush1.msra.mxu0 %v2407_v28  ;;  %1930 = vmatpush3.msra.mxu1 %v2454_v42  ;;  %v2902_v28 = vld [vmem:[#allocation5 + $0x170] sm:$0xff] }
 0x44a   :  { %982 = vmatprep.subr.mxu0 %v2411_v29  ;;  %1931 = vmatprep.subr.mxu1 %v3183_v0  ;;  %v791_v29 = vld [vmem:[#allocation2 + $0x60] sm:$0xff] }
 0x44b   :  { %983 = vmatpush1.msra.mxu0 %v2417_v31  ;;  %1932 = vmatpush3.msra.mxu1 %v2462_v44  ;;  %v792_v44 = vld [vmem:[#allocation2 + $0x68] sm:$0xff] }
 0x44c   :  { %984 = vmatprep.subr.mxu0 %v2421_v32  ;;  %1933 = vmatprep.subr.mxu1 %v3183_v0 }
 0x44d   :  { %985 = vmatpush1.msra.mxu0 %v2427_v34  ;;  %1934 = vmatpush3.msra.mxu1 %v2468_v45 }
 0x44e   :  { %986 = vmatprep.subr.mxu0 %v2431_v35  ;;  %1935 = vmatprep.subr.mxu1 %v3183_v0 }
 0x44f   :  { %987 = vmatpush1.msra.mxu0 %v2437_v37  ;;  %1936 = vmatpush3.msra.mxu1 %v2473_v46 }
 0x450   :  { %988 = vmatprep.subr.mxu0 %v3197_v2  ;;  %1937 = vmatprep.subr.mxu1 %v3183_v0 }
 0x451   :  { %989 = vmatpush1.msra.mxu0 %v3198_v3  ;;  %1938 = vmatpush3.msra.mxu1 %v3199_v4 }
 0x452   :  { %990 = vmatprep.subr.mxu0 %v3200_v5  ;;  %1939 = vmatprep.subr.mxu1 %v3183_v0 }
 0x453   :  { %991 = vmatpush1.msra.mxu0 %v3201_v6  ;;  %1024 = vmatprep.mubr.f32.mxu0 %v3183_v0 }
 0x454   :  { %1940 = vmatpush3.msra.mxu1 %v3202_v7  ;;  %1941 = vmatprep.mubr.msk.f32.mxu1 %vm2281_vm0, %v3183_v0 }
 0x455   :  { %1126 = vmatprep.subr.mxu0 %v2902_v28  ;;  %1944 = vmatprep.subr.mxu1 %v3183_v0 }
 0x4f4   :  { %v860_v31 = vpop.f32.mrf.mxu0  ;;  %v931_v32 = vpop.f32.mrf.mxu1 }
 0x4f5   :  { %v861_v34 = vadd.f32 %v860_v31, %v3204_v12  ;;  %v932_v6 = vadd.f32 %v931_v32, %v2565_v47  ;;  %v2984_v31 = vld [vmem:[#allocation5 + $0x60] sm:$0xff]  ;;  %v2987_v32 = vld [vmem:[#allocation5 + $0x70] sm:$0xff] }
 0x4f6   :  { %v862_v35 = vpop.f32.mrf.mxu0  ;;  %v1908_v36 = vpop.f32.mrf.mxu1 }
 0x4f7   :  { %v935_v37 = vadd.f32 %v861_v34, %v791_v29  ;;  %v863_v42 = vadd.f32 %v862_v35, %v2562_v58  ;;  %v2980_v29 = vld [vmem:[#allocation5 + $0x68] sm:$0xff]  ;;  %v2990_v34 = vld [vmem:[#allocation5 + $0x50] sm:$0xff]  ;;  %v2997_v36 = vld [vmem:[#allocation5 + $0x58] sm:$0xff] }
 0x4f8   :  { %v2994_v35 = vld [vmem:[#allocation5 + $0x48] sm:$0xff] }
 0x4f9   :  { %v1572_v39 = vmul.f32 -1.442695, %v935_v37  ;;  %v942_v45 = vadd.f32 %v863_v42, %v792_v44  ;;  %v3000_v37 = vld [vmem:[#allocation5 + $0x38] sm:$0xff]  ;;  %v3007_v42 = vld [vmem:[#allocation5 + $0x40] sm:$0xff] }
 0x4fa   :  { %v3010_v44 = vld [vmem:[#allocation5 + $0x20] sm:$0xff] }
 0x4fb   :  { %2099 = vpow2.f32 %v1572_v39  ;;  %v1573_v46 = vmul.f32 -1.442695, %v942_v45  ;;  %v3004_v39 = vld [vmem:[#allocation5 + $0x30] sm:$0xff]  ;;  %3205 = vst [vmem:[#allocation13_spill] sm:$0xff] %v3010_v44  ;;  %v3014_v45 = vld [vmem:[#allocation5 + $0x18] sm:$0xff] }
 0x4fc   :  { %3206 = vst [vmem:[#allocation14_spill] sm:$0xff] %v3014_v45 }
 0x4fd   :  { %2101 = vpow2.f32 %v1573_v46  ;;  %v3017_v46 = vld [vmem:[#allocation5 + $0x28] sm:$0xff] }
 0x4fe   :  { %3207 = vst [vmem:[#allocation17_spill] sm:$0xff] %v3017_v46 }
 0x508   :  { %v2100_v2 = vpop.eup %2099 }
 0x509   :  { %v939_v3 = vadd.f32 1.0, %v2100_v2  ;;  %v3020_v2 = vld [vmem:[#allocation5 + $0x8] sm:$0xff] }
 0x50a   :  { %v2102_v4 = vpop.eup %2101  ;;  %3208 = vst [vmem:[#allocation15_spill] sm:$0xff] %v3020_v2 }
 0x50b   :  { %2103 = vrcp.f32 %v939_v3  ;;  %v946_v5 = vadd.f32 1.0, %v2102_v4  ;;  %v3024_v3 = vld [vmem:[#allocation5] sm:$0xff]  ;;  %v3028_v4 = vld [vmem:[#allocation5 + $0x10] sm:$0xff] }
 0x50c   :  { %3209 = vst [vmem:[#allocation16_spill] sm:$0xff] %v3024_v3  ;;  %3210 = vst [vmem:[#allocation18_spill] sm:$0xff] %v3028_v4 }
 0x50d   :  { %2105 = vrcp.f32 %v946_v5  ;;  %v957_v5 = vld [vmem:[#allocation2 + $0x78] sm:$0xff] }
 0x518   :  { %v2104_v7 = vpop.eup %2103 }
 0x519   :  { %v949_v20 = vmul.f32 %v2104_v7, %v932_v6 }
 0x51a   :  { %v2106_v23 = vpop.eup %2105 }
 0x51b   :  { %v950_v22 = vadd.f32 %v949_v20, %v793_v19  ;;  %v952_v25 = vsub.f32 1.0, %v2106_v23  ;;  %v954_v38 = vmul.f32 %v2106_v23, %v2793_v49  ;;  %v2977_v49 = vld [vmem:[#allocation5 + $0x88] sm:$0xff] }
 0x51d   :  { %2107 = vtanh.f32 %v950_v22 }
 0x52a   :  { %v2108_v26 = vpop.eup %2107 }
 0x52b   :  { %v953_v52 = vmul.f32 %v2108_v26, %v952_v25 }
 0x52d   :  { %v2910_v40 = vadd.f32 %v954_v38, %v953_v52  ;;  %v958_v52 = vld [vmem:[#allocation2 + $0x80] sm:$0xff] }
 0x52f   :  { %1025 = vmatmul.mubr.f32.vlgmr.msra.gmra.mxu0 %v2910_v40  ;;  %1942 = vmatmul.mubr.f32.vlgmr.msra.gmra.mxu1 %v2910_v40 }
 0x530   :  { %1127 = vmatpush1.msra.mxu0 %v2797_v55  ;;  %1945 = vmatpush3.msra.mxu1 %v2915_v53 }
 0x531   :  { %1128 = vmatprep.subr.mxu0 %v2801_v56  ;;  %1946 = vmatprep.subr.mxu1 %v3183_v0 }
 0x532   :  { %1129 = vmatpush1.msra.mxu0 %v2805_v60  ;;  %1947 = vmatpush3.msra.mxu1 %v2921_v51 }
 0x533   :  { %1130 = vmatprep.subr.mxu0 %v2809_v59  ;;  %1948 = vmatprep.subr.mxu1 %v3183_v0 }
 0x534   :  { %1131 = vmatpush1.msra.mxu0 %v2813_v43  ;;  %1949 = vmatpush3.msra.mxu1 %v2927_v41 }
 0x535   :  { %1132 = vmatprep.subr.mxu0 %v2817_v14  ;;  %1950 = vmatprep.subr.mxu1 %v3183_v0 }
 0x536   :  { %1133 = vmatpush1.msra.mxu0 %v2821_v8  ;;  %1951 = vmatpush3.msra.mxu1 %v2933_v50 }
 0x537   :  { %1134 = vmatprep.subr.mxu0 %v2825_v16  ;;  %1952 = vmatprep.subr.mxu1 %v3183_v0 }
 0x538   :  { %1135 = vmatpush1.msra.mxu0 %v2829_v9  ;;  %1953 = vmatpush3.msra.mxu1 %v2939_v63 }
 0x539   :  { %1136 = vmatprep.subr.mxu0 %v2833_v18  ;;  %1954 = vmatprep.subr.mxu1 %v3183_v0 }
 0x53a   :  { %1137 = vmatpush1.msra.mxu0 %v2837_v10  ;;  %1955 = vmatpush3.msra.mxu1 %v2945_v48 }
 0x53b   :  { %1138 = vmatprep.subr.mxu0 %v2841_v21  ;;  %1956 = vmatprep.subr.mxu1 %v3183_v0 }
 0x53c   :  { %1139 = vmatpush1.msra.mxu0 %v2845_v11  ;;  %1957 = vmatpush3.msra.mxu1 %v2951_v61 }
 0x53d   :  { %1140 = vmatprep.subr.mxu0 %v2849_v24  ;;  %1958 = vmatprep.subr.mxu1 %v3183_v0 }
 0x53e   :  { %1141 = vmatpush1.msra.mxu0 %v2853_v13  ;;  %1959 = vmatpush3.msra.mxu1 %v2957_v62 }
 0x53f   :  { %1142 = vmatprep.subr.mxu0 %v2857_v27  ;;  %1960 = vmatprep.subr.mxu1 %v3183_v0 }
 0x540   :  { %1143 = vmatpush1.msra.mxu0 %v2861_v15  ;;  %1961 = vmatpush3.msra.mxu1 %v2963_v1 }
 0x541   :  { %1144 = vmatprep.subr.mxu0 %v2865_v30  ;;  %1962 = vmatprep.subr.mxu1 %v3183_v0 }
 0x542   :  { %1145 = vmatpush1.msra.mxu0 %v2869_v17  ;;  %1963 = vmatpush3.msra.mxu1 %v2969_v57 }
 0x543   :  { %1146 = vmatprep.subr.mxu0 %v2873_v33  ;;  %1964 = vmatprep.subr.mxu1 %v3183_v0 }
 0x544   :  { %1147 = vmatpush1.msra.mxu0 %v2974_v54  ;;  %1965 = vmatpush3.msra.mxu1 %v2977_v49 }
 0x545   :  { %1148 = vmatprep.subr.mxu0 %v2980_v29  ;;  %1966 = vmatprep.subr.mxu1 %v3183_v0 }
 0x546   :  { %1149 = vmatpush1.msra.mxu0 %v2984_v31  ;;  %1967 = vmatpush3.msra.mxu1 %v2987_v32 }
 0x547   :  { %1150 = vmatprep.subr.mxu0 %v2990_v34  ;;  %1968 = vmatprep.subr.mxu1 %v3183_v0 }
 0x548   :  { %1151 = vmatpush1.msra.mxu0 %v2994_v35  ;;  %1969 = vmatpush3.msra.mxu1 %v2997_v36 }
 0x549   :  { %1152 = vmatprep.subr.mxu0 %v3000_v37  ;;  %1970 = vmatprep.subr.mxu1 %v3183_v0 }
 0x54a   :  { %1153 = vmatpush1.msra.mxu0 %v3004_v39  ;;  %1971 = vmatpush3.msra.mxu1 %v3007_v42 }
 0x54b   :  { %1154 = vmatprep.subr.mxu0 %v3010_v44  ;;  %1972 = vmatprep.subr.mxu1 %v3183_v0 }
 0x54c   :  { %1155 = vmatpush1.msra.mxu0 %v3014_v45  ;;  %1973 = vmatpush3.msra.mxu1 %v3017_v46 }
 0x54d   :  { %1156 = vmatprep.subr.mxu0 %v3020_v2  ;;  %1974 = vmatprep.subr.mxu1 %v3183_v0 }
 0x54e   :  { %1157 = vmatpush1.msra.mxu0 %v3024_v3  ;;  %1190 = vmatprep.mubr.f32.mxu0 %v3183_v0 }
 0x54f   :  { %1975 = vmatpush3.msra.mxu1 %v3028_v4  ;;  %1976 = vmatprep.mubr.msk.f32.mxu1 %vm2281_vm0, %v3183_v0 }
 0x550   :  { %1292 = vmatprep.subr.mxu0 %v2902_v28  ;;  %1979 = vmatprep.subr.mxu1 %v3183_v0 }
 0x5ef   :  { %v1026_v6 = vpop.f32.mrf.mxu0  ;;  %v1097_v7 = vpop.f32.mrf.mxu1 }
 0x5f0   :  { %v1027_v19 = vadd.f32 %v1026_v6, %v3204_v12  ;;  %v1098_v45 = vadd.f32 %v1097_v7, %v2565_v47  ;;  %v959_v6 = vld [vmem:[#allocation2 + $0x88] sm:$0xff] }
 0x5f1   :  { %v1028_v20 = vpop.f32.mrf.mxu0  ;;  %v1943_v22 = vpop.f32.mrf.mxu1  ;;  %v1455_v7 = vld [vmem:[#allocation7 + $0x8] sm:$0xff] }
 0x5f2   :  { %v1101_v23 = vadd.f32 %v1027_v19, %v957_v5  ;;  %v1029_v26 = vadd.f32 %v1028_v20, %v2562_v58 }
 0x5f4   :  { %v1574_v25 = vmul.f32 -1.442695, %v1101_v23  ;;  %v1108_v38 = vadd.f32 %v1029_v26, %v958_v52  ;;  %v1454_v26 = vld [vmem:[#allocation7] sm:$0xff]  ;;  %v1289_v52 = vld [vmem:[#allocation2 + $0xa8] sm:$0xff] }
 0x5f6   :  { %2109 = vpow2.f32 %v1574_v25  ;;  %v1575_v4 = vmul.f32 -1.442695, %v1108_v38 }
 0x5f8   :  { %2111 = vpow2.f32 %v1575_v4 }
 0x603   :  { %v2110_v3 = vpop.eup %2109 }
 0x604   :  { %v1105_v28 = vadd.f32 1.0, %v2110_v3  ;;  %v1456_v3 = vld [vmem:[#allocation7 + $0x10] sm:$0xff] }
 0x605   :  { %v2112_v2 = vpop.eup %2111 }
 0x606   :  { %2113 = vrcp.f32 %v1105_v28  ;;  %v1112_v46 = vadd.f32 1.0, %v2112_v2  ;;  %v1457_v2 = vld [vmem:[#allocation7 + $0x18] sm:$0xff] }
 0x608   :  { %2115 = vrcp.f32 %v1112_v46  ;;  %v1458_v46 = vld [vmem:[#allocation7 + $0x20] sm:$0xff] }
 0x613   :  { %v2114_v44 = vpop.eup %2113 }
 0x614   :  { %v1115_v12 = vmul.f32 %v2114_v44, %v1098_v45  ;;  %v1460_v44 = vld [vmem:[#allocation7 + $0x30] sm:$0xff]  ;;  %v1459_v45 = vld [vmem:[#allocation7 + $0x28] sm:$0xff] }
 0x615   :  { %v2116_v19 = vpop.eup %2115 }
 0x616   :  { %v1116_v5 = vadd.f32 %v1115_v12, %v959_v6  ;;  %v1118_v20 = vsub.f32 1.0, %v2116_v19  ;;  %v1120_v25 = vmul.f32 %v2116_v19, %v2910_v40  ;;  %v3211_v12 = vld [vmem:[#allocation13_spill] sm:$0xff] }
 0x618   :  { %2117 = vtanh.f32 %v1116_v5 }
 0x625   :  { %v2118_v22 = vpop.eup %2117 }
 0x626   :  { %v1119_v23 = vmul.f32 %v2118_v22, %v1118_v20 }
 0x628   :  { %v3039_v4 = vadd.f32 %v1120_v25, %v1119_v23  ;;  %v1290_v25 = vld [vmem:[#allocation2 + $0xb0] sm:$0xff] }
 0x62a   :  { %1191 = vmatmul.mubr.f32.vlgmr.msra.gmra.mxu0 %v3039_v4  ;;  %1977 = vmatmul.mubr.f32.vlgmr.msra.gmra.mxu1 %v3039_v4 }
 0x62b   :  { %1293 = vmatpush1.msra.mxu0 %v2797_v55  ;;  %1980 = vmatpush3.msra.mxu1 %v2915_v53  ;;  %v3212_v55 = vld [vmem:[#allocation14_spill] sm:$0xff] }
 0x62c   :  { %1294 = vmatprep.subr.mxu0 %v2801_v56  ;;  %1981 = vmatprep.subr.mxu1 %v3183_v0  ;;  %v3213_v56 = vld [vmem:[#allocation17_spill] sm:$0xff] }
 0x62d   :  { %1295 = vmatpush1.msra.mxu0 %v2805_v60  ;;  %1982 = vmatpush3.msra.mxu1 %v2921_v51  ;;  %v3214_v60 = vld [vmem:[#allocation15_spill] sm:$0xff] }
 0x62e   :  { %1296 = vmatprep.subr.mxu0 %v2809_v59  ;;  %1983 = vmatprep.subr.mxu1 %v3183_v0  ;;  %v3215_v59 = vld [vmem:[#allocation16_spill] sm:$0xff] }
 0x62f   :  { %1297 = vmatpush1.msra.mxu0 %v2813_v43  ;;  %1984 = vmatpush3.msra.mxu1 %v2927_v41  ;;  %v3216_v43 = vld [vmem:[#allocation18_spill] sm:$0xff] }
 0x630   :  { %1298 = vmatprep.subr.mxu0 %v2817_v14  ;;  %1985 = vmatprep.subr.mxu1 %v3183_v0  ;;  %v1123_v14 = vld [vmem:[#allocation2 + $0x90] sm:$0xff] }
 0x631   :  { %1299 = vmatpush1.msra.mxu0 %v2821_v8  ;;  %1986 = vmatpush3.msra.mxu1 %v2933_v50  ;;  %v1125_v50 = vld [vmem:[#allocation2 + $0xa0] sm:$0xff] }
 0x632   :  { %1300 = vmatprep.subr.mxu0 %v2825_v16  ;;  %1987 = vmatprep.subr.mxu1 %v3183_v0 }
 0x633   :  { %1301 = vmatpush1.msra.mxu0 %v2829_v9  ;;  %1988 = vmatpush3.msra.mxu1 %v2939_v63  ;;  %v3217_v9 = vld [vmem:[#allocation19_spill] sm:$0xff] }
 0x634   :  { %1302 = vmatprep.subr.mxu0 %v2833_v18  ;;  %1989 = vmatprep.subr.mxu1 %v3183_v0 }
 0x635   :  { %1303 = vmatpush1.msra.mxu0 %v2837_v10  ;;  %1990 = vmatpush3.msra.mxu1 %v2945_v48 }
 0x636   :  { %1304 = vmatprep.subr.mxu0 %v2841_v21  ;;  %1991 = vmatprep.subr.mxu1 %v3183_v0 }
 0x637   :  { %1305 = vmatpush1.msra.mxu0 %v2845_v11  ;;  %1992 = vmatpush3.msra.mxu1 %v2951_v61 }
 0x638   :  { %1306 = vmatprep.subr.mxu0 %v2849_v24  ;;  %1993 = vmatprep.subr.mxu1 %v3183_v0 }
 0x639   :  { %1307 = vmatpush1.msra.mxu0 %v2853_v13  ;;  %1994 = vmatpush3.msra.mxu1 %v2957_v62 }
 0x63a   :  { %1308 = vmatprep.subr.mxu0 %v2857_v27  ;;  %1995 = vmatprep.subr.mxu1 %v3183_v0  ;;  %v1124_v27 = vld [vmem:[#allocation2 + $0x98] sm:$0xff] }
 0x63b   :  { %1309 = vmatpush1.msra.mxu0 %v2861_v15  ;;  %1996 = vmatpush3.msra.mxu1 %v2963_v1 }
 0x63c   :  { %1310 = vmatprep.subr.mxu0 %v2865_v30  ;;  %1997 = vmatprep.subr.mxu1 %v3183_v0 }
 0x63d   :  { %1311 = vmatpush1.msra.mxu0 %v2869_v17  ;;  %1998 = vmatpush3.msra.mxu1 %v2969_v57 }
 0x63e   :  { %1312 = vmatprep.subr.mxu0 %v2873_v33  ;;  %1999 = vmatprep.subr.mxu1 %v3183_v0 }
 0x63f   :  { %1313 = vmatpush1.msra.mxu0 %v2974_v54  ;;  %2000 = vmatpush3.msra.mxu1 %v2977_v49 }
 0x640   :  { %1314 = vmatprep.subr.mxu0 %v2980_v29  ;;  %2001 = vmatprep.subr.mxu1 %v3183_v0  ;;  %v1469_v29 = vld [vmem:[#allocation7 + $0x78] sm:$0xff] }
 0x641   :  { %1315 = vmatpush1.msra.mxu0 %v2984_v31  ;;  %2002 = vmatpush3.msra.mxu1 %v2987_v32  ;;  %v1468_v31 = vld [vmem:[#allocation7 + $0x70] sm:$0xff]  ;;  %v1467_v32 = vld [vmem:[#allocation7 + $0x68] sm:$0xff] }
 0x642   :  { %1316 = vmatprep.subr.mxu0 %v2990_v34  ;;  %2003 = vmatprep.subr.mxu1 %v3183_v0  ;;  %v1466_v34 = vld [vmem:[#allocation7 + $0x60] sm:$0xff] }
 0x643   :  { %1317 = vmatpush1.msra.mxu0 %v2994_v35  ;;  %2004 = vmatpush3.msra.mxu1 %v2997_v36  ;;  %v1465_v35 = vld [vmem:[#allocation7 + $0x58] sm:$0xff]  ;;  %v1464_v36 = vld [vmem:[#allocation7 + $0x50] sm:$0xff] }
 0x644   :  { %1318 = vmatprep.subr.mxu0 %v3000_v37  ;;  %2005 = vmatprep.subr.mxu1 %v3183_v0  ;;  %v1463_v37 = vld [vmem:[#allocation7 + $0x48] sm:$0xff] }
 0x645   :  { %1319 = vmatpush1.msra.mxu0 %v3004_v39  ;;  %2006 = vmatpush3.msra.mxu1 %v3007_v42  ;;  %v1462_v39 = vld [vmem:[#allocation7 + $0x40] sm:$0xff]  ;;  %v1461_v42 = vld [vmem:[#allocation7 + $0x38] sm:$0xff] }
 0x646   :  { %1320 = vmatprep.subr.mxu0 %v3211_v12  ;;  %2007 = vmatprep.subr.mxu1 %v3183_v0 }
 0x647   :  { %1321 = vmatpush1.msra.mxu0 %v3212_v55  ;;  %2008 = vmatpush3.msra.mxu1 %v3213_v56 }
 0x648   :  { %1322 = vmatprep.subr.mxu0 %v3214_v60  ;;  %2009 = vmatprep.subr.mxu1 %v3183_v0 }
 0x649   :  { %1323 = vmatpush1.msra.mxu0 %v3215_v59  ;;  %1356 = vmatprep.mubr.f32.mxu0 %v3183_v0 }
 0x64a   :  { %2010 = vmatpush3.msra.mxu1 %v3216_v43  ;;  %2011 = vmatprep.mubr.msk.f32.mxu1 %vm2281_vm0, %v3183_v0 }
 0x64b   :  { %2014 = vmatprep.subr.mxu0 %v3183_v0 }
 0x6ea   :  { %v1192_v8 = vpop.f32.mrf.mxu0  ;;  %v1263_v16 = vpop.f32.mrf.mxu1 }
 0x6eb   :  { %v1193_v18 = vadd.f32 %v1192_v8, %v3217_v9  ;;  %v1264_v51 = vadd.f32 %v1263_v16, %v2565_v47 }
 0x6ec   :  { %v1194_v10 = vpop.f32.mrf.mxu0  ;;  %v1978_v21 = vpop.f32.mrf.mxu1 }
 0x6ed   :  { %v1267_v11 = vadd.f32 %v1193_v18, %v1123_v14  ;;  %v1195_v13 = vadd.f32 %v1194_v10, %v2562_v58  ;;  %v1291_v14 = vld [vmem:[#allocation2 + $0xb8] sm:$0xff] }
 0x6ef   :  { %v1576_v24 = vmul.f32 -1.442695, %v1267_v11  ;;  %v1274_v15 = vadd.f32 %v1195_v13, %v1124_v27 }
 0x6f1   :  { %2119 = vpow2.f32 %v1576_v24  ;;  %v1577_v30 = vmul.f32 -1.442695, %v1274_v15  ;;  %v1580_v24 = vld [vmem:[%s3148_s4] ss:$0 sm:$0xff] }
 0x6f3   :  { %2121 = vpow2.f32 %v1577_v30 }
 0x6fe   :  { %v2120_v17 = vpop.eup %2119 }
 0x6ff   :  { %v1271_v33 = vadd.f32 1.0, %v2120_v17 }
 0x700   :  { %v2122_v40 = vpop.eup %2121 }
 0x701   :  { %2123 = vrcp.f32 %v1271_v33  ;;  %v1278_v53 = vadd.f32 1.0, %v2122_v40 }
 0x703   :  { %2125 = vrcp.f32 %v1278_v53 }
 0x70e   :  { %v2124_v41 = vpop.eup %2123 }
 0x70f   :  { %v1281_v63 = vmul.f32 %v2124_v41, %v1264_v51 }
 0x710   :  { %v2126_v61 = vpop.eup %2125 }
 0x711   :  { %v1282_v48 = vadd.f32 %v1281_v63, %v1125_v50  ;;  %v1284_v62 = vsub.f32 1.0, %v2126_v61  ;;  %v1286_v54 = vmul.f32 %v2126_v61, %v3039_v4 }
 0x713   :  { %2127 = vtanh.f32 %v1282_v48 }
 0x720   :  { %v2128_v1 = vpop.eup %2127 }
 0x721   :  { %v1285_v57 = vmul.f32 %v2128_v1, %v1284_v62 }
 0x723   :  { %v3113_v49 = vadd.f32 %v1286_v54, %v1285_v57 }
 0x725   :  { %1357 = vmatmul.mubr.f32.vlgmr.msra.gmra.mxu0 %v3113_v49  ;;  %2012 = vmatmul.mubr.f32.vlgmr.msra.gmra.mxu1 %v3113_v49 }
 0x726   :  { %2046 = vmatprep.mubr.msk.f32.mxu0 %vm2281_vm0, %v3183_v0  ;;  %2015 = vmatpush3.msra.mxu0 %v1469_v29 }
 0x727   :  { %2016 = vmatprep.subr.mxu0 %v3183_v0 }
 0x728   :  { %2017 = vmatpush3.msra.mxu0 %v1468_v31 }
 0x729   :  { %2018 = vmatprep.subr.mxu0 %v3183_v0 }
 0x72a   :  { %2019 = vmatpush3.msra.mxu0 %v1467_v32 }
 0x72b   :  { %2020 = vmatprep.subr.mxu0 %v3183_v0 }
 0x72c   :  { %2021 = vmatpush3.msra.mxu0 %v1466_v34 }
 0x72d   :  { %2022 = vmatprep.subr.mxu0 %v3183_v0 }
 0x72e   :  { %2023 = vmatpush3.msra.mxu0 %v1465_v35 }
 0x72f   :  { %2024 = vmatprep.subr.mxu0 %v3183_v0 }
 0x730   :  { %2025 = vmatpush3.msra.mxu0 %v1464_v36 }
 0x731   :  { %2026 = vmatprep.subr.mxu0 %v3183_v0 }
 0x732   :  { %2027 = vmatpush3.msra.mxu0 %v1463_v37 }
 0x733   :  { %2028 = vmatprep.subr.mxu0 %v3183_v0 }
 0x734   :  { %2029 = vmatpush3.msra.mxu0 %v1462_v39 }
 0x735   :  { %2030 = vmatprep.subr.mxu0 %v3183_v0 }
 0x736   :  { %2031 = vmatpush3.msra.mxu0 %v1461_v42 }
 0x737   :  { %2032 = vmatprep.subr.mxu0 %v3183_v0 }
 0x738   :  { %2033 = vmatpush3.msra.mxu0 %v1460_v44 }
 0x739   :  { %2034 = vmatprep.subr.mxu0 %v3183_v0 }
 0x73a   :  { %2035 = vmatpush3.msra.mxu0 %v1459_v45 }
 0x73b   :  { %2036 = vmatprep.subr.mxu0 %v3183_v0 }
 0x73c   :  { %2037 = vmatpush3.msra.mxu0 %v1458_v46 }
 0x73d   :  { %2038 = vmatprep.subr.mxu0 %v3183_v0 }
 0x73e   :  { %2039 = vmatpush3.msra.mxu0 %v1457_v2 }
 0x73f   :  { %2040 = vmatprep.subr.mxu0 %v3183_v0 }
 0x740   :  { %2041 = vmatpush3.msra.mxu0 %v1456_v3 }
 0x741   :  { %2042 = vmatprep.subr.mxu0 %v3183_v0 }
 0x742   :  { %2043 = vmatpush3.msra.mxu0 %v1455_v7 }
 0x743   :  { %2044 = vmatprep.subr.mxu0 %v3183_v0 }
 0x744   :  { %2045 = vmatpush3.msra.mxu0 %v1454_v26 }
 0x7e5   :  { %v1358_v38 = vpop.f32.mrf.mxu0  ;;  %v1429_v28 = vpop.f32.mrf.mxu1 }
 0x7e6   :  { %v1359_v6 = vadd.f32 %v1358_v38, %v3217_v9  ;;  %v1430_v59 = vadd.f32 %v1429_v28, %v2565_v47 }
 0x7e7   :  { %v1360_v5 = vpop.f32.mrf.mxu0  ;;  %v2013_v19 = vpop.f32.mrf.mxu1 }
 0x7e8   :  { %v1433_v20 = vadd.f32 %v1359_v6, %v1289_v52  ;;  %v1361_v23 = vadd.f32 %v1360_v5, %v2562_v58 }
 0x7ea   :  { %v1578_v22 = vmul.f32 -1.442695, %v1433_v20  ;;  %v1440_v4 = vadd.f32 %v1361_v23, %v1290_v25 }
 0x7ec   :  { %2129 = vpow2.f32 %v1578_v22  ;;  %v1579_v12 = vmul.f32 -1.442695, %v1440_v4 }
 0x7ee   :  { %2131 = vpow2.f32 %v1579_v12 }
 0x7f9   :  { %v2130_v55 = vpop.eup %2129 }
 0x7fa   :  { %v1437_v56 = vadd.f32 1.0, %v2130_v55 }
 0x7fb   :  { %v2132_v0 = vpop.eup %2131 }
 0x7fc   :  { %2133 = vrcp.f32 %v1437_v56  ;;  %v1444_v60 = vadd.f32 1.0, %v2132_v0 }
 0x7fe   :  { %2135 = vrcp.f32 %v1444_v60 }
 0x809   :  { %v2134_v43 = vpop.eup %2133 }
 0x80a   :  { %v1447_v8 = vmul.f32 %v2134_v43, %v1430_v59 }
 0x80b   :  { %v2136_v9 = vpop.eup %2135 }
 0x80c   :  { %v1448_v16 = vadd.f32 %v1447_v8, %v1291_v14  ;;  %v1450_v58 = vsub.f32 1.0, %v2136_v9  ;;  %v1452_v21 = vmul.f32 %v2136_v9, %v3113_v49 }
 0x80e   :  { %2137 = vtanh.f32 %v1448_v16 }
 0x81b   :  { %v2138_v18 = vpop.eup %2137 }
 0x81c   :  { %v1451_v10 = vmul.f32 %v2138_v18, %v1450_v58 }
 0x81e   :  { %v1453_v11 = vadd.f32 %v1452_v21, %v1451_v10 }
 0x820   :  { %2047 = vmatmul.mubr.f32.vlgmr.msra.gmra.mxu0 %v1453_v11 }
 0x8e0   :  { %v1543_v47 = vpop.f32.mrf.mxu0 }
 0x8e1   :  { %v1544_v13 = vadd.f32 %v1580_v24, %v1543_v47 }
 0x8e2   :  { %v2048_v27 = vpop.f32.mrf.mxu0 }
 0x8e3   :  { %1547 = vst [vmem:[#allocation8] sm:$0xff] %v1544_v13 }
 0x8e4   :  { %2258 = shalt.err (!%p2255_p5)
}
 0x8e5   :  { %1557 = dma.vmem_to_hbm [thread:$0]  %s1555_s13, 128, %s3149_s5, [#allocation4]  }
 0x8e6   :  { %2271 = dma.done.wait [#allocation4], 128  }
 0x8e7   :  { %2272 = vsyncadd [#allocation4], 4294967168 }
 0x8e8   :  { %1561 = vsyncpa [#allocation3], 1 }
 0x8e9   :  { %1562 = vsyncpa [#allocation6], 1 }
 0x8ea   :  { %1563 = vsyncpa [#allocation4], 1 }

</bundles_post_ra>
